<compile_context>
chip_gen: v7x
topology: tpu7x:2x2x1
jax: 0.10.0
libtpu: 0.0.40
codegen_flags: <defaults>
</compile_context>

<pallas_src>
import functools

import jax
import jax.numpy as jnp
from jax import lax
from jax.experimental import pallas as pl
from jax.experimental.pallas import tpu as pltpu


# ------------------------------ helpers ------------------------------------ #

def _cdiv(a, b):
    return -(-a // b)


def fold_bn(gamma, beta, mean, var, eps=1e-5):
    scale = gamma / jnp.sqrt(var + eps)
    bias = beta - mean * scale
    return scale, bias  # (C,), (C,)


def _conv_taps(w_oihw):
    """(Cout, Cin, kh, kw) -> (kh*kw, Cin, Cout), tap index t = di*kw + dj."""
    cout, cin, kh, kw = w_oihw.shape
    return jnp.transpose(w_oihw, (2, 3, 1, 0)).reshape(kh * kw, cin, cout)


# ----------------------------- fused kernel -------------------------------- #

def _basic_block_kernel(x_ref, w1_ref, b1_ref, w2_ref, b2_ref, *rest,
                        stride, ho, wo, has_projection):
    """One batch element of relu(bn2(conv2(relu(bn1(conv1(x))))) + shortcut(x)).

    x_ref : (P, Hph, Wph, Cin) bf16 -- polyphase views of the zero-padded input
            (P = stride**2; for stride==1, P==1 and phase 0 is the padded image).
    w1_ref: (9, Cin, planes)    bf16, bn1 scale folded in.
    w2_ref: (9, planes, planes) bf16, bn2 scale folded in.
    b1/b2 : (1, planes) f32 folded bn biases.
    rest  : [ws_ref (Cin, planes), bs_ref (1, planes)] if has_projection,
            then o_ref (ho, wo, planes), then o1pad scratch (ho+2, wo+2, planes).
    """
    if has_projection:
        ws_ref, bs_ref, o_ref, o1pad_ref = rest
    else:
        o_ref, o1pad_ref = rest

    s = stride
    cin = x_ref.shape[-1]
    planes = o_ref.shape[-1]

    def tap(di, dj):
        # Padded-input pixel (s*oh + di, s*ow + dj) lives in phase
        # (di % s, dj % s) at contiguous offset (di // s, dj // s).
        p = (di % s) * s + (dj % s)
        a, c = di // s, dj // s
        return x_ref[p, a:a + ho, c:c + wo, :]            # (ho, wo, cin) bf16

    # --- conv1 + bn1 + relu (bf16 MXU matmuls, f32 accumulation) -------------
    acc1 = jnp.zeros((ho * wo, planes), jnp.float32)
    for di in range(3):
        for dj in range(3):
            xs = tap(di, dj).reshape(ho * wo, cin)
            acc1 = acc1 + jnp.dot(xs, w1_ref[di * 3 + dj],
                                  preferred_element_type=jnp.float32)
    out1 = jnp.maximum(acc1 + b1_ref[...], 0.0)

    # --- conv1 output, zero-padded, staged in a VMEM scratch (never in HBM) --
    o1pad_ref[...] = jnp.zeros_like(o1pad_ref)
    o1pad_ref[1:ho + 1, 1:wo + 1, :] = (
        out1.reshape(ho, wo, planes).astype(o1pad_ref.dtype))

    # --- conv2 + bn2 ----------------------------------------------------------
    acc2 = jnp.zeros((ho * wo, planes), jnp.float32)
    for di in range(3):
        for dj in range(3):
            ys = o1pad_ref[di:di + ho, dj:dj + wo, :].reshape(ho * wo, planes)
            acc2 = acc2 + jnp.dot(ys, w2_ref[di * 3 + dj],
                                  preferred_element_type=jnp.float32)
    out2 = acc2 + b2_ref[...]

    # --- shortcut (fused): centre tap (1,1) is exactly x[::s, ::s] ------------
    xc = tap(1, 1).reshape(ho * wo, cin)
    if has_projection:
        res = jnp.dot(xc, ws_ref[...], preferred_element_type=jnp.float32)
        res = res + bs_ref[...]
    else:
        res = xc.astype(jnp.float32)                      # identity: cin==planes

    out = jnp.maximum(out2 + res, 0.0)                    # drop == Identity
    o_ref[...] = out.reshape(ho, wo, planes).astype(o_ref.dtype)


# ------------------------------- wrapper ------------------------------------ #

def basic_block_forward(x_nchw, params, stride, out_dtype=jnp.float32):
    """BasicBlock forward (inference-mode BN). Input/output are NCHW like PyTorch."""
    n, cin, h, w = x_nchw.shape
    planes = params["conv1_w"].shape[0]
    s = int(stride)
    ho = (h + 2 - 3) // s + 1
    wo = (w + 2 - 3) // s + 1

    # NCHW -> NHWC, bf16 (MXU-native; halves input HBM traffic).
    x = jnp.transpose(x_nchw, (0, 2, 3, 1)).astype(jnp.bfloat16)
    xp = jnp.pad(x, ((0, 0), (1, 1), (1, 1), (0, 0)))      # spatial pad = 1

    if s == 1:
        nphase, hph, wph = 1, h + 2, w + 2
        xph = xp[:, None]                                   # (N, 1, H+2, W+2, C)
    else:
        # Polyphase split (total bytes == padded-input bytes): makes every conv
        # tap a contiguous static slice inside the kernel — no im2col, no
        # strided VMEM access.
        nphase = s * s
        hph = max(_cdiv(h + 2, s), 2 // s + ho)
        wph = max(_cdiv(w + 2, s), 2 // s + wo)
        xpp = jnp.pad(xp, ((0, 0), (0, s * hph - (h + 2)),
                           (0, s * wph - (w + 2)), (0, 0)))
        xph = jnp.stack([xpp[:, pi::s, pj::s, :]
                         for pi in range(s) for pj in range(s)], axis=1)

    # Fold BN scales into bf16 weights; biases stay f32 for the epilogue.
    s1, b1 = fold_bn(*params["bn1"])
    s2, b2 = fold_bn(*params["bn2"])
    w1 = (_conv_taps(params["conv1_w"]) * s1[None, None, :]).astype(jnp.bfloat16)
    w2 = (_conv_taps(params["conv2_w"]) * s2[None, None, :]).astype(jnp.bfloat16)
    b1 = b1.reshape(1, planes).astype(jnp.float32)
    b2 = b2.reshape(1, planes).astype(jnp.float32)

    has_projection = "sc_w" in params
    if not has_projection:
        assert s == 1 and cin == planes, "identity shortcut requires matching shape"

    def const_spec(shape):
        return pl.BlockSpec(shape, lambda b, _n=len(shape): (0,) * _n)

    operands = [xph, w1, b1, w2, b2]
    in_specs = [
        pl.BlockSpec((None, nphase, hph, wph, cin), lambda b: (b, 0, 0, 0, 0)),
        const_spec((9, cin, planes)),
        const_spec((1, planes)),
        const_spec((9, planes, planes)),
        const_spec((1, planes)),
    ]
    if has_projection:
        ss_, bs_ = fold_bn(*params["sc_bn"])
        ws = (params["sc_w"][:, :, 0, 0].T * ss_[None, :]).astype(jnp.bfloat16)
        operands += [ws, bs_.reshape(1, planes).astype(jnp.float32)]
        in_specs += [const_spec((cin, planes)), const_spec((1, planes))]

    # Accurate cost estimate (input streamed once, weights once, output once).
    flops = 2 * n * ho * wo * (9 * cin * planes + 9 * planes * planes
                               + (cin * planes if has_projection else 0))
    out_bytes = n * ho * wo * planes * jnp.dtype(out_dtype).itemsize
    weight_bytes = (9 * cin * planes + 9 * planes * planes
                    + (cin * planes if has_projection else 0)) * 2
    bytes_accessed = int(n * nphase * hph * wph * cin * 2 + weight_bytes
                         + 8 * planes + out_bytes)
    cost = pl.CostEstimate(flops=int(flops), transcendentals=0,
                           bytes_accessed=bytes_accessed)

    # VMEM budget: double-buffered in/out blocks + resident weights + scratch +
    # live f32 accumulators; capped at 48 MiB so a v7x TC (64 MiB) keeps headroom.
    x_block = nphase * hph * wph * cin * 2
    out_block = ho * wo * planes * jnp.dtype(out_dtype).itemsize
    scratch_bytes = (ho + 2) * (wo + 2) * planes * 2
    work_bytes = 4 * ho * wo * max(cin, planes) * 4
    need = 2 * x_block + 2 * out_block + 2 * weight_bytes + scratch_bytes + work_bytes
    vmem_limit = int(min(48 * 2 ** 20, max(32 * 2 ** 20, 2 * need)))

    kernel = functools.partial(_basic_block_kernel, stride=s, ho=ho, wo=wo,
                               has_projection=has_projection)
    out_nhwc = pl.pallas_call(
        kernel,
        out_shape=jax.ShapeDtypeStruct((n, ho, wo, planes), out_dtype),
        grid=(n,),
        in_specs=in_specs,
        out_specs=pl.BlockSpec((None, ho, wo, planes), lambda b: (b, 0, 0, 0)),
        scratch_shapes=[pltpu.VMEM((ho + 2, wo + 2, planes), jnp.bfloat16)],
        compiler_params=pltpu.CompilerParams(
            dimension_semantics=("parallel",),
            vmem_limit_bytes=vmem_limit),
        cost_estimate=cost,
    )(*operands)

    return jnp.transpose(out_nhwc, (0, 3, 1, 2))            # back to NCHW


# --------------------------- params / reference ----------------------------- #

def init_params(key, in_planes, planes, stride):
    ks = jax.random.split(key, 8)
    p = {
        "conv1_w": 0.1 * jax.random.normal(ks[0], (planes, in_planes, 3, 3), jnp.float32),
        "conv2_w": 0.1 * jax.random.normal(ks[1], (planes, planes, 3, 3), jnp.float32),
        "bn1": (1.0 + 0.1 * jax.random.normal(ks[2], (planes,)),
                0.1 * jax.random.normal(ks[3], (planes,)),
                0.05 * jax.random.normal(ks[4], (planes,)),
                jnp.abs(1.0 + 0.1 * jax.random.normal(ks[5], (planes,)))),
        "bn2": (1.0 + 0.05 * jax.random.normal(ks[6], (planes,)),
                0.05 * jax.random.normal(ks[7], (planes,)),
                jnp.zeros((planes,)), jnp.ones((planes,))),
    }
    if stride != 1 or in_planes != planes:
        ks2 = jax.random.split(ks[0], 3)
        p["sc_w"] = 0.1 * jax.random.normal(ks2[0], (planes, in_planes, 1, 1), jnp.float32)
        p["sc_bn"] = (1.0 + 0.1 * jax.random.normal(ks2[1], (planes,)),
                      0.1 * jax.random.normal(ks2[2], (planes,)),
                      jnp.zeros((planes,)), jnp.ones((planes,)))
    return p


def reference_forward(x_nchw, params, stride):
    """Pure-JAX f32 reference (lax conv) for correctness checking."""
    def conv(x, wgt, s):
        return lax.conv_general_dilated(
            x, wgt, window_strides=(s, s),
            padding=[(wgt.shape[2] // 2, wgt.shape[2] // 2)] * 2,
            dimension_numbers=("NCHW", "OIHW", "NCHW"))

    def bn(x, prm, eps=1e-5):
        g, b, m, v = prm
        sc = (g / jnp.sqrt(v + eps)).reshape(1, -1, 1, 1)
        bi = (b - m * g / jnp.sqrt(v + eps)).reshape(1, -1, 1, 1)
        return x * sc + bi

    out = jax.nn.relu(bn(conv(x_nchw, params["conv1_w"], stride), params["bn1"]))
    out = bn(conv(out, params["conv2_w"], 1), params["bn2"])
    if "sc_w" in params:
        sc = bn(conv(x_nchw, params["sc_w"], stride), params["sc_bn"])
    else:
        sc = x_nchw
    return jax.nn.relu(out + sc)


def _run_case(key, n, cin, planes, h, w, stride, atol):
    k_x, k_p = jax.random.split(key)
    x = jax.random.normal(k_x, (n, cin, h, w), jnp.float32)
    params = init_params(k_p, cin, planes, stride)

    out = jax.block_until_ready(basic_block_forward(x, params, stride))
    ref = jax.block_until_ready(reference_forward(x, params, stride))

    ho, wo = h // stride, w // stride
    assert out.shape == ref.shape == (n, planes, ho, wo), (out.shape, ref.shape)
    # bf16 MXU inputs / bf16 residual with f32 accumulation vs. an f32 reference.
    assert jnp.allclose(out, ref, atol=atol, rtol=atol), float(
        jnp.max(jnp.abs(out - ref)))


if __name__ == "__main__":
    key = jax.random.PRNGKey(0)
    k1, k2 = jax.random.split(key)

    # Case 1: projection (1x1 conv) shortcut, stride 2.
    _run_case(k1, n=2, cin=4, planes=8, h=16, w=16, stride=2, atol=4e-2)
    # Case 2: identity shortcut, stride 1, larger spatial extent.
    _run_case(k2, n=2, cin=8, planes=8, h=32, w=32, stride=1, atol=4e-2)

    print("KERNEL_OK")
</pallas_src>

<mosaic_0001>
module attributes {stable_mosaic.version = 11 : i64} {
  func.func @_basic_block_kernel(%arg0: i32, %arg1: memref<1x4x9x9x4xbf16, #tpu.memory_space<vmem>>, %arg2: memref<9x4x8xbf16, #tpu.memory_space<vmem>>, %arg3: memref<1x8xf32, #tpu.memory_space<vmem>>, %arg4: memref<9x8x8xbf16, #tpu.memory_space<vmem>>, %arg5: memref<1x8xf32, #tpu.memory_space<vmem>>, %arg6: memref<4x8xbf16, #tpu.memory_space<vmem>>, %arg7: memref<1x8xf32, #tpu.memory_space<vmem>>, %arg8: memref<1x8x8x8xf32, #tpu.memory_space<vmem>>, %arg9: memref<10x10x8xbf16, #tpu.memory_space<vmem>>) attributes {dimension_semantics = [#tpu.dimension_semantics<parallel>], iteration_bounds = array<i64: 2>, scalar_prefetch = 0 : i64, scratch_operands = 1 : i64, tpu.core_type = #tpu.core_type<tc>, window_params = [{transform_indices = @transform_0, window_bounds = array<i64: 1, 4, 9, 9, 4>}, {pipeline_mode = #tpu.pipeline_mode<synchronous>, transform_indices = @transform_1, window_bounds = array<i64: 9, 4, 8>}, {pipeline_mode = #tpu.pipeline_mode<synchronous>, transform_indices = @transform_2, window_bounds = array<i64: 1, 8>}, {pipeline_mode = #tpu.pipeline_mode<synchronous>, transform_indices = @transform_3, window_bounds = array<i64: 9, 8, 8>}, {pipeline_mode = #tpu.pipeline_mode<synchronous>, transform_indices = @transform_4, window_bounds = array<i64: 1, 8>}, {pipeline_mode = #tpu.pipeline_mode<synchronous>, transform_indices = @transform_5, window_bounds = array<i64: 4, 8>}, {pipeline_mode = #tpu.pipeline_mode<synchronous>, transform_indices = @transform_6, window_bounds = array<i64: 1, 8>}, {transform_indices = @transform_7, window_bounds = array<i64: 1, 8, 8, 8>}]} {
    %cst = arith.constant 0.000000e+00 : f32
    %0 = vector.broadcast %cst : f32 to vector<64x8xf32>
    %c0 = arith.constant 0 : index
    %c0_0 = arith.constant 0 : index
    %c0_1 = arith.constant 0 : index
    %c0_2 = arith.constant 0 : index
    %c0_3 = arith.constant 0 : index
    %1 = vector.load %arg1[%c0, %c0_0, %c0_1, %c0_2, %c0_3] : memref<1x4x9x9x4xbf16, #tpu.memory_space<vmem>>, vector<1x1x8x8x4xbf16>
    %2 = vector.shape_cast %1 : vector<1x1x8x8x4xbf16> to vector<8x8x4xbf16>
    %3 = vector.shape_cast %2 : vector<8x8x4xbf16> to vector<64x4xbf16>
    %c0_4 = arith.constant 0 : index
    %c0_5 = arith.constant 0 : index
    %c0_6 = arith.constant 0 : index
    %4 = vector.load %arg2[%c0_4, %c0_5, %c0_6] : memref<9x4x8xbf16, #tpu.memory_space<vmem>>, vector<1x4x8xbf16>
    %5 = vector.shape_cast %4 : vector<1x4x8xbf16> to vector<4x8xbf16>
    %cst_7 = arith.constant dense<0.000000e+00> : vector<64x8xf32>
    %6 = tpu.matmul %3, %5, %cst_7 {dimension_numbers = #tpu.dot_dimension_numbers<[1], [0], [0], [1], [0, 0, 1, 1], [], []>} : vector<64x4xbf16>, vector<4x8xbf16>, vector<64x8xf32> -> vector<64x8xf32>
    %7 = arith.addf %0, %6 : vector<64x8xf32>
    %c0_8 = arith.constant 0 : index
    %c1 = arith.constant 1 : index
    %c0_9 = arith.constant 0 : index
    %c0_10 = arith.constant 0 : index
    %c0_11 = arith.constant 0 : index
    %8 = vector.load %arg1[%c0_8, %c1, %c0_9, %c0_10, %c0_11] : memref<1x4x9x9x4xbf16, #tpu.memory_space<vmem>>, vector<1x1x8x8x4xbf16>
    %9 = vector.shape_cast %8 : vector<1x1x8x8x4xbf16> to vector<8x8x4xbf16>
    %10 = vector.shape_cast %9 : vector<8x8x4xbf16> to vector<64x4xbf16>
    %c1_12 = arith.constant 1 : index
    %c0_13 = arith.constant 0 : index
    %c0_14 = arith.constant 0 : index
    %11 = vector.load %arg2[%c1_12, %c0_13, %c0_14] : memref<9x4x8xbf16, #tpu.memory_space<vmem>>, vector<1x4x8xbf16>
    %12 = vector.shape_cast %11 : vector<1x4x8xbf16> to vector<4x8xbf16>
    %cst_15 = arith.constant dense<0.000000e+00> : vector<64x8xf32>
    %13 = tpu.matmul %10, %12, %cst_15 {dimension_numbers = #tpu.dot_dimension_numbers<[1], [0], [0], [1], [0, 0, 1, 1], [], []>} : vector<64x4xbf16>, vector<4x8xbf16>, vector<64x8xf32> -> vector<64x8xf32>
    %14 = arith.addf %7, %13 : vector<64x8xf32>
    %c0_16 = arith.constant 0 : index
    %c0_17 = arith.constant 0 : index
    %c0_18 = arith.constant 0 : index
    %c1_19 = arith.constant 1 : index
    %c0_20 = arith.constant 0 : index
    %15 = vector.load %arg1[%c0_16, %c0_17, %c0_18, %c1_19, %c0_20] : memref<1x4x9x9x4xbf16, #tpu.memory_space<vmem>>, vector<1x1x8x8x4xbf16>
    %16 = vector.shape_cast %15 : vector<1x1x8x8x4xbf16> to vector<8x8x4xbf16>
    %17 = vector.shape_cast %16 : vector<8x8x4xbf16> to vector<64x4xbf16>
    %c2 = arith.constant 2 : index
    %c0_21 = arith.constant 0 : index
    %c0_22 = arith.constant 0 : index
    %18 = vector.load %arg2[%c2, %c0_21, %c0_22] : memref<9x4x8xbf16, #tpu.memory_space<vmem>>, vector<1x4x8xbf16>
    %19 = vector.shape_cast %18 : vector<1x4x8xbf16> to vector<4x8xbf16>
    %cst_23 = arith.constant dense<0.000000e+00> : vector<64x8xf32>
    %20 = tpu.matmul %17, %19, %cst_23 {dimension_numbers = #tpu.dot_dimension_numbers<[1], [0], [0], [1], [0, 0, 1, 1], [], []>} : vector<64x4xbf16>, vector<4x8xbf16>, vector<64x8xf32> -> vector<64x8xf32>
    %21 = arith.addf %14, %20 : vector<64x8xf32>
    %c0_24 = arith.constant 0 : index
    %c2_25 = arith.constant 2 : index
    %c0_26 = arith.constant 0 : index
    %c0_27 = arith.constant 0 : index
    %c0_28 = arith.constant 0 : index
    %22 = vector.load %arg1[%c0_24, %c2_25, %c0_26, %c0_27, %c0_28] : memref<1x4x9x9x4xbf16, #tpu.memory_space<vmem>>, vector<1x1x8x8x4xbf16>
    %23 = vector.shape_cast %22 : vector<1x1x8x8x4xbf16> to vector<8x8x4xbf16>
    %24 = vector.shape_cast %23 : vector<8x8x4xbf16> to vector<64x4xbf16>
    %c3 = arith.constant 3 : index
    %c0_29 = arith.constant 0 : index
    %c0_30 = arith.constant 0 : index
    %25 = vector.load %arg2[%c3, %c0_29, %c0_30] : memref<9x4x8xbf16, #tpu.memory_space<vmem>>, vector<1x4x8xbf16>
    %26 = vector.shape_cast %25 : vector<1x4x8xbf16> to vector<4x8xbf16>
    %cst_31 = arith.constant dense<0.000000e+00> : vector<64x8xf32>
    %27 = tpu.matmul %24, %26, %cst_31 {dimension_numbers = #tpu.dot_dimension_numbers<[1], [0], [0], [1], [0, 0, 1, 1], [], []>} : vector<64x4xbf16>, vector<4x8xbf16>, vector<64x8xf32> -> vector<64x8xf32>
    %28 = arith.addf %21, %27 : vector<64x8xf32>
    %c0_32 = arith.constant 0 : index
    %c3_33 = arith.constant 3 : index
    %c0_34 = arith.constant 0 : index
    %c0_35 = arith.constant 0 : index
    %c0_36 = arith.constant 0 : index
    %29 = vector.load %arg1[%c0_32, %c3_33, %c0_34, %c0_35, %c0_36] : memref<1x4x9x9x4xbf16, #tpu.memory_space<vmem>>, vector<1x1x8x8x4xbf16>
    %30 = vector.shape_cast %29 : vector<1x1x8x8x4xbf16> to vector<8x8x4xbf16>
    %31 = vector.shape_cast %30 : vector<8x8x4xbf16> to vector<64x4xbf16>
    %c4 = arith.constant 4 : index
    %c0_37 = arith.constant 0 : index
    %c0_38 = arith.constant 0 : index
    %32 = vector.load %arg2[%c4, %c0_37, %c0_38] : memref<9x4x8xbf16, #tpu.memory_space<vmem>>, vector<1x4x8xbf16>
    %33 = vector.shape_cast %32 : vector<1x4x8xbf16> to vector<4x8xbf16>
    %cst_39 = arith.constant dense<0.000000e+00> : vector<64x8xf32>
    %34 = tpu.matmul %31, %33, %cst_39 {dimension_numbers = #tpu.dot_dimension_numbers<[1], [0], [0], [1], [0, 0, 1, 1], [], []>} : vector<64x4xbf16>, vector<4x8xbf16>, vector<64x8xf32> -> vector<64x8xf32>
    %35 = arith.addf %28, %34 : vector<64x8xf32>
    %c0_40 = arith.constant 0 : index
    %c2_41 = arith.constant 2 : index
    %c0_42 = arith.constant 0 : index
    %c1_43 = arith.constant 1 : index
    %c0_44 = arith.constant 0 : index
    %36 = vector.load %arg1[%c0_40, %c2_41, %c0_42, %c1_43, %c0_44] : memref<1x4x9x9x4xbf16, #tpu.memory_space<vmem>>, vector<1x1x8x8x4xbf16>
    %37 = vector.shape_cast %36 : vector<1x1x8x8x4xbf16> to vector<8x8x4xbf16>
    %38 = vector.shape_cast %37 : vector<8x8x4xbf16> to vector<64x4xbf16>
    %c5 = arith.constant 5 : index
    %c0_45 = arith.constant 0 : index
    %c0_46 = arith.constant 0 : index
    %39 = vector.load %arg2[%c5, %c0_45, %c0_46] : memref<9x4x8xbf16, #tpu.memory_space<vmem>>, vector<1x4x8xbf16>
    %40 = vector.shape_cast %39 : vector<1x4x8xbf16> to vector<4x8xbf16>
    %cst_47 = arith.constant dense<0.000000e+00> : vector<64x8xf32>
    %41 = tpu.matmul %38, %40, %cst_47 {dimension_numbers = #tpu.dot_dimension_numbers<[1], [0], [0], [1], [0, 0, 1, 1], [], []>} : vector<64x4xbf16>, vector<4x8xbf16>, vector<64x8xf32> -> vector<64x8xf32>
    %42 = arith.addf %35, %41 : vector<64x8xf32>
    %c0_48 = arith.constant 0 : index
    %c0_49 = arith.constant 0 : index
    %c1_50 = arith.constant 1 : index
    %c0_51 = arith.constant 0 : index
    %c0_52 = arith.constant 0 : index
    %43 = vector.load %arg1[%c0_48, %c0_49, %c1_50, %c0_51, %c0_52] : memref<1x4x9x9x4xbf16, #tpu.memory_space<vmem>>, vector<1x1x8x8x4xbf16>
    %44 = vector.shape_cast %43 : vector<1x1x8x8x4xbf16> to vector<8x8x4xbf16>
    %45 = vector.shape_cast %44 : vector<8x8x4xbf16> to vector<64x4xbf16>
    %c6 = arith.constant 6 : index
    %c0_53 = arith.constant 0 : index
    %c0_54 = arith.constant 0 : index
    %46 = vector.load %arg2[%c6, %c0_53, %c0_54] : memref<9x4x8xbf16, #tpu.memory_space<vmem>>, vector<1x4x8xbf16>
    %47 = vector.shape_cast %46 : vector<1x4x8xbf16> to vector<4x8xbf16>
    %cst_55 = arith.constant dense<0.000000e+00> : vector<64x8xf32>
    %48 = tpu.matmul %45, %47, %cst_55 {dimension_numbers = #tpu.dot_dimension_numbers<[1], [0], [0], [1], [0, 0, 1, 1], [], []>} : vector<64x4xbf16>, vector<4x8xbf16>, vector<64x8xf32> -> vector<64x8xf32>
    %49 = arith.addf %42, %48 : vector<64x8xf32>
    %c0_56 = arith.constant 0 : index
    %c1_57 = arith.constant 1 : index
    %c1_58 = arith.constant 1 : index
    %c0_59 = arith.constant 0 : index
    %c0_60 = arith.constant 0 : index
    %50 = vector.load %arg1[%c0_56, %c1_57, %c1_58, %c0_59, %c0_60] : memref<1x4x9x9x4xbf16, #tpu.memory_space<vmem>>, vector<1x1x8x8x4xbf16>
    %51 = vector.shape_cast %50 : vector<1x1x8x8x4xbf16> to vector<8x8x4xbf16>
    %52 = vector.shape_cast %51 : vector<8x8x4xbf16> to vector<64x4xbf16>
    %c7 = arith.constant 7 : index
    %c0_61 = arith.constant 0 : index
    %c0_62 = arith.constant 0 : index
    %53 = vector.load %arg2[%c7, %c0_61, %c0_62] : memref<9x4x8xbf16, #tpu.memory_space<vmem>>, vector<1x4x8xbf16>
    %54 = vector.shape_cast %53 : vector<1x4x8xbf16> to vector<4x8xbf16>
    %cst_63 = arith.constant dense<0.000000e+00> : vector<64x8xf32>
    %55 = tpu.matmul %52, %54, %cst_63 {dimension_numbers = #tpu.dot_dimension_numbers<[1], [0], [0], [1], [0, 0, 1, 1], [], []>} : vector<64x4xbf16>, vector<4x8xbf16>, vector<64x8xf32> -> vector<64x8xf32>
    %56 = arith.addf %49, %55 : vector<64x8xf32>
    %c0_64 = arith.constant 0 : index
    %c0_65 = arith.constant 0 : index
    %c1_66 = arith.constant 1 : index
    %c1_67 = arith.constant 1 : index
    %c0_68 = arith.constant 0 : index
    %57 = vector.load %arg1[%c0_64, %c0_65, %c1_66, %c1_67, %c0_68] : memref<1x4x9x9x4xbf16, #tpu.memory_space<vmem>>, vector<1x1x8x8x4xbf16>
    %58 = vector.shape_cast %57 : vector<1x1x8x8x4xbf16> to vector<8x8x4xbf16>
    %59 = vector.shape_cast %58 : vector<8x8x4xbf16> to vector<64x4xbf16>
    %c8 = arith.constant 8 : index
    %c0_69 = arith.constant 0 : index
    %c0_70 = arith.constant 0 : index
    %60 = vector.load %arg2[%c8, %c0_69, %c0_70] : memref<9x4x8xbf16, #tpu.memory_space<vmem>>, vector<1x4x8xbf16>
    %61 = vector.shape_cast %60 : vector<1x4x8xbf16> to vector<4x8xbf16>
    %cst_71 = arith.constant dense<0.000000e+00> : vector<64x8xf32>
    %62 = tpu.matmul %59, %61, %cst_71 {dimension_numbers = #tpu.dot_dimension_numbers<[1], [0], [0], [1], [0, 0, 1, 1], [], []>} : vector<64x4xbf16>, vector<4x8xbf16>, vector<64x8xf32> -> vector<64x8xf32>
    %63 = arith.addf %56, %62 : vector<64x8xf32>
    %c0_72 = arith.constant 0 : index
    %c0_73 = arith.constant 0 : index
    %64 = vector.load %arg3[%c0_72, %c0_73] : memref<1x8xf32, #tpu.memory_space<vmem>>, vector<1x8xf32>
    %65 = vector.broadcast %64 : vector<1x8xf32> to vector<64x8xf32>
    %66 = arith.addf %63, %65 : vector<64x8xf32>
    %cst_74 = arith.constant 0.000000e+00 : f32
    %67 = vector.broadcast %cst_74 : f32 to vector<64x8xf32>
    %68 = arith.maximumf %66, %67 : vector<64x8xf32>
    %cst_75 = arith.constant 0.000000e+00 : bf16
    %69 = vector.broadcast %cst_75 : bf16 to vector<10x10x8xbf16>
    %c0_76 = arith.constant 0 : index
    %c0_77 = arith.constant 0 : index
    %c0_78 = arith.constant 0 : index
    %70 = vector.load %arg9[%c0_76, %c0_77, %c0_78] : memref<10x10x8xbf16, #tpu.memory_space<vmem>>, vector<10x10x8xbf16>
    tpu.vector_store %arg9[%c0_76, %c0_77, %c0_78], %69 {strides = array<i32>} : memref<10x10x8xbf16, #tpu.memory_space<vmem>>, vector<10x10x8xbf16>,
    %71 = vector.shape_cast %68 : vector<64x8xf32> to vector<8x8x8xf32>
    %72 = arith.truncf %71 : vector<8x8x8xf32> to vector<8x8x8xbf16>
    %c1_79 = arith.constant 1 : index
    %c1_80 = arith.constant 1 : index
    %c0_81 = arith.constant 0 : index
    %73 = vector.load %arg9[%c1_79, %c1_80, %c0_81] : memref<10x10x8xbf16, #tpu.memory_space<vmem>>, vector<8x8x8xbf16>
    tpu.vector_store %arg9[%c1_79, %c1_80, %c0_81], %72 {strides = array<i32>} : memref<10x10x8xbf16, #tpu.memory_space<vmem>>, vector<8x8x8xbf16>,
    %cst_82 = arith.constant 0.000000e+00 : f32
    %74 = vector.broadcast %cst_82 : f32 to vector<64x8xf32>
    %c0_83 = arith.constant 0 : index
    %c0_84 = arith.constant 0 : index
    %c0_85 = arith.constant 0 : index
    %75 = vector.load %arg9[%c0_83, %c0_84, %c0_85] : memref<10x10x8xbf16, #tpu.memory_space<vmem>>, vector<8x8x8xbf16>
    %76 = vector.shape_cast %75 : vector<8x8x8xbf16> to vector<64x8xbf16>
    %c0_86 = arith.constant 0 : index
    %c0_87 = arith.constant 0 : index
    %c0_88 = arith.constant 0 : index
    %77 = vector.load %arg4[%c0_86, %c0_87, %c0_88] : memref<9x8x8xbf16, #tpu.memory_space<vmem>>, vector<1x8x8xbf16>
    %78 = vector.shape_cast %77 : vector<1x8x8xbf16> to vector<8x8xbf16>
    %cst_89 = arith.constant dense<0.000000e+00> : vector<64x8xf32>
    %79 = tpu.matmul %76, %78, %cst_89 {dimension_numbers = #tpu.dot_dimension_numbers<[1], [0], [0], [1], [0, 0, 1, 1], [], []>} : vector<64x8xbf16>, vector<8x8xbf16>, vector<64x8xf32> -> vector<64x8xf32>
    %80 = arith.addf %74, %79 : vector<64x8xf32>
    %c0_90 = arith.constant 0 : index
    %c1_91 = arith.constant 1 : index
    %c0_92 = arith.constant 0 : index
    %81 = vector.load %arg9[%c0_90, %c1_91, %c0_92] : memref<10x10x8xbf16, #tpu.memory_space<vmem>>, vector<8x8x8xbf16>
    %82 = vector.shape_cast %81 : vector<8x8x8xbf16> to vector<64x8xbf16>
    %c1_93 = arith.constant 1 : index
    %c0_94 = arith.constant 0 : index
    %c0_95 = arith.constant 0 : index
    %83 = vector.load %arg4[%c1_93, %c0_94, %c0_95] : memref<9x8x8xbf16, #tpu.memory_space<vmem>>, vector<1x8x8xbf16>
    %84 = vector.shape_cast %83 : vector<1x8x8xbf16> to vector<8x8xbf16>
    %cst_96 = arith.constant dense<0.000000e+00> : vector<64x8xf32>
    %85 = tpu.matmul %82, %84, %cst_96 {dimension_numbers = #tpu.dot_dimension_numbers<[1], [0], [0], [1], [0, 0, 1, 1], [], []>} : vector<64x8xbf16>, vector<8x8xbf16>, vector<64x8xf32> -> vector<64x8xf32>
    %86 = arith.addf %80, %85 : vector<64x8xf32>
    %c0_97 = arith.constant 0 : index
    %c2_98 = arith.constant 2 : index
    %c0_99 = arith.constant 0 : index
    %87 = vector.load %arg9[%c0_97, %c2_98, %c0_99] : memref<10x10x8xbf16, #tpu.memory_space<vmem>>, vector<8x8x8xbf16>
    %88 = vector.shape_cast %87 : vector<8x8x8xbf16> to vector<64x8xbf16>
    %c2_100 = arith.constant 2 : index
    %c0_101 = arith.constant 0 : index
    %c0_102 = arith.constant 0 : index
    %89 = vector.load %arg4[%c2_100, %c0_101, %c0_102] : memref<9x8x8xbf16, #tpu.memory_space<vmem>>, vector<1x8x8xbf16>
    %90 = vector.shape_cast %89 : vector<1x8x8xbf16> to vector<8x8xbf16>
    %cst_103 = arith.constant dense<0.000000e+00> : vector<64x8xf32>
    %91 = tpu.matmul %88, %90, %cst_103 {dimension_numbers = #tpu.dot_dimension_numbers<[1], [0], [0], [1], [0, 0, 1, 1], [], []>} : vector<64x8xbf16>, vector<8x8xbf16>, vector<64x8xf32> -> vector<64x8xf32>
    %92 = arith.addf %86, %91 : vector<64x8xf32>
    %c1_104 = arith.constant 1 : index
    %c0_105 = arith.constant 0 : index
    %c0_106 = arith.constant 0 : index
    %93 = vector.load %arg9[%c1_104, %c0_105, %c0_106] : memref<10x10x8xbf16, #tpu.memory_space<vmem>>, vector<8x8x8xbf16>
    %94 = vector.shape_cast %93 : vector<8x8x8xbf16> to vector<64x8xbf16>
    %c3_107 = arith.constant 3 : index
    %c0_108 = arith.constant 0 : index
    %c0_109 = arith.constant 0 : index
    %95 = vector.load %arg4[%c3_107, %c0_108, %c0_109] : memref<9x8x8xbf16, #tpu.memory_space<vmem>>, vector<1x8x8xbf16>
    %96 = vector.shape_cast %95 : vector<1x8x8xbf16> to vector<8x8xbf16>
    %cst_110 = arith.constant dense<0.000000e+00> : vector<64x8xf32>
    %97 = tpu.matmul %94, %96, %cst_110 {dimension_numbers = #tpu.dot_dimension_numbers<[1], [0], [0], [1], [0, 0, 1, 1], [], []>} : vector<64x8xbf16>, vector<8x8xbf16>, vector<64x8xf32> -> vector<64x8xf32>
    %98 = arith.addf %92, %97 : vector<64x8xf32>
    %c1_111 = arith.constant 1 : index
    %c1_112 = arith.constant 1 : index
    %c0_113 = arith.constant 0 : index
    %99 = vector.load %arg9[%c1_111, %c1_112, %c0_113] : memref<10x10x8xbf16, #tpu.memory_space<vmem>>, vector<8x8x8xbf16>
    %100 = vector.shape_cast %99 : vector<8x8x8xbf16> to vector<64x8xbf16>
    %c4_114 = arith.constant 4 : index
    %c0_115 = arith.constant 0 : index
    %c0_116 = arith.constant 0 : index
    %101 = vector.load %arg4[%c4_114, %c0_115, %c0_116] : memref<9x8x8xbf16, #tpu.memory_space<vmem>>, vector<1x8x8xbf16>
    %102 = vector.shape_cast %101 : vector<1x8x8xbf16> to vector<8x8xbf16>
    %cst_117 = arith.constant dense<0.000000e+00> : vector<64x8xf32>
    %103 = tpu.matmul %100, %102, %cst_117 {dimension_numbers = #tpu.dot_dimension_numbers<[1], [0], [0], [1], [0, 0, 1, 1], [], []>} : vector<64x8xbf16>, vector<8x8xbf16>, vector<64x8xf32> -> vector<64x8xf32>
    %104 = arith.addf %98, %103 : vector<64x8xf32>
    %c1_118 = arith.constant 1 : index
    %c2_119 = arith.constant 2 : index
    %c0_120 = arith.constant 0 : index
    %105 = vector.load %arg9[%c1_118, %c2_119, %c0_120] : memref<10x10x8xbf16, #tpu.memory_space<vmem>>, vector<8x8x8xbf16>
    %106 = vector.shape_cast %105 : vector<8x8x8xbf16> to vector<64x8xbf16>
    %c5_121 = arith.constant 5 : index
    %c0_122 = arith.constant 0 : index
    %c0_123 = arith.constant 0 : index
    %107 = vector.load %arg4[%c5_121, %c0_122, %c0_123] : memref<9x8x8xbf16, #tpu.memory_space<vmem>>, vector<1x8x8xbf16>
    %108 = vector.shape_cast %107 : vector<1x8x8xbf16> to vector<8x8xbf16>
    %cst_124 = arith.constant dense<0.000000e+00> : vector<64x8xf32>
    %109 = tpu.matmul %106, %108, %cst_124 {dimension_numbers = #tpu.dot_dimension_numbers<[1], [0], [0], [1], [0, 0, 1, 1], [], []>} : vector<64x8xbf16>, vector<8x8xbf16>, vector<64x8xf32> -> vector<64x8xf32>
    %110 = arith.addf %104, %109 : vector<64x8xf32>
    %c2_125 = arith.constant 2 : index
    %c0_126 = arith.constant 0 : index
    %c0_127 = arith.constant 0 : index
    %111 = vector.load %arg9[%c2_125, %c0_126, %c0_127] : memref<10x10x8xbf16, #tpu.memory_space<vmem>>, vector<8x8x8xbf16>
    %112 = vector.shape_cast %111 : vector<8x8x8xbf16> to vector<64x8xbf16>
    %c6_128 = arith.constant 6 : index
    %c0_129 = arith.constant 0 : index
    %c0_130 = arith.constant 0 : index
    %113 = vector.load %arg4[%c6_128, %c0_129, %c0_130] : memref<9x8x8xbf16, #tpu.memory_space<vmem>>, vector<1x8x8xbf16>
    %114 = vector.shape_cast %113 : vector<1x8x8xbf16> to vector<8x8xbf16>
    %cst_131 = arith.constant dense<0.000000e+00> : vector<64x8xf32>
    %115 = tpu.matmul %112, %114, %cst_131 {dimension_numbers = #tpu.dot_dimension_numbers<[1], [0], [0], [1], [0, 0, 1, 1], [], []>} : vector<64x8xbf16>, vector<8x8xbf16>, vector<64x8xf32> -> vector<64x8xf32>
    %116 = arith.addf %110, %115 : vector<64x8xf32>
    %c2_132 = arith.constant 2 : index
    %c1_133 = arith.constant 1 : index
    %c0_134 = arith.constant 0 : index
    %117 = vector.load %arg9[%c2_132, %c1_133, %c0_134] : memref<10x10x8xbf16, #tpu.memory_space<vmem>>, vector<8x8x8xbf16>
    %118 = vector.shape_cast %117 : vector<8x8x8xbf16> to vector<64x8xbf16>
    %c7_135 = arith.constant 7 : index
    %c0_136 = arith.constant 0 : index
    %c0_137 = arith.constant 0 : index
    %119 = vector.load %arg4[%c7_135, %c0_136, %c0_137] : memref<9x8x8xbf16, #tpu.memory_space<vmem>>, vector<1x8x8xbf16>
    %120 = vector.shape_cast %119 : vector<1x8x8xbf16> to vector<8x8xbf16>
    %cst_138 = arith.constant dense<0.000000e+00> : vector<64x8xf32>
    %121 = tpu.matmul %118, %120, %cst_138 {dimension_numbers = #tpu.dot_dimension_numbers<[1], [0], [0], [1], [0, 0, 1, 1], [], []>} : vector<64x8xbf16>, vector<8x8xbf16>, vector<64x8xf32> -> vector<64x8xf32>
    %122 = arith.addf %116, %121 : vector<64x8xf32>
    %c2_139 = arith.constant 2 : index
    %c2_140 = arith.constant 2 : index
    %c0_141 = arith.constant 0 : index
    %123 = vector.load %arg9[%c2_139, %c2_140, %c0_141] : memref<10x10x8xbf16, #tpu.memory_space<vmem>>, vector<8x8x8xbf16>
    %124 = vector.shape_cast %123 : vector<8x8x8xbf16> to vector<64x8xbf16>
    %c8_142 = arith.constant 8 : index
    %c0_143 = arith.constant 0 : index
    %c0_144 = arith.constant 0 : index
    %125 = vector.load %arg4[%c8_142, %c0_143, %c0_144] : memref<9x8x8xbf16, #tpu.memory_space<vmem>>, vector<1x8x8xbf16>
    %126 = vector.shape_cast %125 : vector<1x8x8xbf16> to vector<8x8xbf16>
    %cst_145 = arith.constant dense<0.000000e+00> : vector<64x8xf32>
    %127 = tpu.matmul %124, %126, %cst_145 {dimension_numbers = #tpu.dot_dimension_numbers<[1], [0], [0], [1], [0, 0, 1, 1], [], []>} : vector<64x8xbf16>, vector<8x8xbf16>, vector<64x8xf32> -> vector<64x8xf32>
    %128 = arith.addf %122, %127 : vector<64x8xf32>
    %c0_146 = arith.constant 0 : index
    %c0_147 = arith.constant 0 : index
    %129 = vector.load %arg5[%c0_146, %c0_147] : memref<1x8xf32, #tpu.memory_space<vmem>>, vector<1x8xf32>
    %130 = vector.broadcast %129 : vector<1x8xf32> to vector<64x8xf32>
    %131 = arith.addf %128, %130 : vector<64x8xf32>
    %c0_148 = arith.constant 0 : index
    %c3_149 = arith.constant 3 : index
    %c0_150 = arith.constant 0 : index
    %c0_151 = arith.constant 0 : index
    %c0_152 = arith.constant 0 : index
    %132 = vector.load %arg1[%c0_148, %c3_149, %c0_150, %c0_151, %c0_152] : memref<1x4x9x9x4xbf16, #tpu.memory_space<vmem>>, vector<1x1x8x8x4xbf16>
    %133 = vector.shape_cast %132 : vector<1x1x8x8x4xbf16> to vector<8x8x4xbf16>
    %134 = vector.shape_cast %133 : vector<8x8x4xbf16> to vector<64x4xbf16>
    %c0_153 = arith.constant 0 : index
    %c0_154 = arith.constant 0 : index
    %135 = vector.load %arg6[%c0_153, %c0_154] : memref<4x8xbf16, #tpu.memory_space<vmem>>, vector<4x8xbf16>
    %cst_155 = arith.constant dense<0.000000e+00> : vector<64x8xf32>
    %136 = tpu.matmul %134, %135, %cst_155 {dimension_numbers = #tpu.dot_dimension_numbers<[1], [0], [0], [1], [0, 0, 1, 1], [], []>} : vector<64x4xbf16>, vector<4x8xbf16>, vector<64x8xf32> -> vector<64x8xf32>
    %c0_156 = arith.constant 0 : index
    %c0_157 = arith.constant 0 : index
    %137 = vector.load %arg7[%c0_156, %c0_157] : memref<1x8xf32, #tpu.memory_space<vmem>>, vector<1x8xf32>
    %138 = vector.broadcast %137 : vector<1x8xf32> to vector<64x8xf32>
    %139 = arith.addf %136, %138 : vector<64x8xf32>
    %140 = arith.addf %131, %139 : vector<64x8xf32>
    %cst_158 = arith.constant 0.000000e+00 : f32
    %141 = vector.broadcast %cst_158 : f32 to vector<64x8xf32>
    %142 = arith.maximumf %140, %141 : vector<64x8xf32>
    %143 = vector.shape_cast %142 : vector<64x8xf32> to vector<8x8x8xf32>
    %c0_159 = arith.constant 0 : index
    %c0_160 = arith.constant 0 : index
    %c0_161 = arith.constant 0 : index
    %c0_162 = arith.constant 0 : index
    %144 = vector.load %arg8[%c0_159, %c0_160, %c0_161, %c0_162] : memref<1x8x8x8xf32, #tpu.memory_space<vmem>>, vector<1x8x8x8xf32>
    %145 = vector.shape_cast %144 : vector<1x8x8x8xf32> to vector<8x8x8xf32>
    %146 = vector.shape_cast %143 : vector<8x8x8xf32> to vector<1x8x8x8xf32>
    tpu.vector_store %arg8[%c0_159, %c0_160, %c0_161, %c0_162], %146 {strides = array<i32>} : memref<1x8x8x8xf32, #tpu.memory_space<vmem>>, vector<1x8x8x8xf32>,
    return
  }
  func.func @transform_0(%arg0: i32) -> (i32, i32, i32, i32, i32) {
    %c0_i32 = arith.constant 0 : i32
    %c0_i32_0 = arith.constant 0 : i32
    %c0_i32_1 = arith.constant 0 : i32
    %c0_i32_2 = arith.constant 0 : i32
    %c0_i32_3 = arith.constant 0 : i32
    return %arg0, %c0_i32, %c0_i32_0, %c0_i32_1, %c0_i32_2 : i32, i32, i32, i32, i32
  }
  func.func @transform_1(%arg0: i32) -> (i32, i32, i32) {
    %c0_i32 = arith.constant 0 : i32
    %c0_i32_0 = arith.constant 0 : i32
    %c0_i32_1 = arith.constant 0 : i32
    %c0_i32_2 = arith.constant 0 : i32
    return %c0_i32, %c0_i32_0, %c0_i32_1 : i32, i32, i32
  }
  func.func @transform_2(%arg0: i32) -> (i32, i32) {
    %c0_i32 = arith.constant 0 : i32
    %c0_i32_0 = arith.constant 0 : i32
    %c0_i32_1 = arith.constant 0 : i32
    return %c0_i32, %c0_i32_0 : i32, i32
  }
  func.func @transform_3(%arg0: i32) -> (i32, i32, i32) {
    %c0_i32 = arith.constant 0 : i32
    %c0_i32_0 = arith.constant 0 : i32
    %c0_i32_1 = arith.constant 0 : i32
    %c0_i32_2 = arith.constant 0 : i32
    return %c0_i32, %c0_i32_0, %c0_i32_1 : i32, i32, i32
  }
  func.func @transform_4(%arg0: i32) -> (i32, i32) {
    %c0_i32 = arith.constant 0 : i32
    %c0_i32_0 = arith.constant 0 : i32
    %c0_i32_1 = arith.constant 0 : i32
    return %c0_i32, %c0_i32_0 : i32, i32
  }
  func.func @transform_5(%arg0: i32) -> (i32, i32) {
    %c0_i32 = arith.constant 0 : i32
    %c0_i32_0 = arith.constant 0 : i32
    %c0_i32_1 = arith.constant 0 : i32
    return %c0_i32, %c0_i32_0 : i32, i32
  }
  func.func @transform_6(%arg0: i32) -> (i32, i32) {
    %c0_i32 = arith.constant 0 : i32
    %c0_i32_0 = arith.constant 0 : i32
    %c0_i32_1 = arith.constant 0 : i32
    return %c0_i32, %c0_i32_0 : i32, i32
  }
  func.func @transform_7(%arg0: i32) -> (i32, i32, i32, i32) {
    %c0_i32 = arith.constant 0 : i32
    %c0_i32_0 = arith.constant 0 : i32
    %c0_i32_1 = arith.constant 0 : i32
    %c0_i32_2 = arith.constant 0 : i32
    return %arg0, %c0_i32, %c0_i32_0, %c0_i32_1 : i32, i32, i32, i32
  }
}

</mosaic_0001>

<bundles_post_ra>
// kernel: tpu_custom_call.1
= control target key start
LH: loop header
LB: loop body
LE: loop exit
PB: predicated region body
PF: predicated region fallthrough
CT: control target
= control target key end

     0   :  { %12 = vsyncpa [#allocation4], 0  ;;  %s5331_s0 = inlined_call_operand.vmem [shape: bf16[2,4,9,9,4], index: 0, kind: input, shape index: {}]   ;;  %s5332_s1 = inlined_call_operand.vmem [shape: bf16[9,4,8], index: 1, kind: input, shape index: {}]   ;;  %s5333_s2 = inlined_call_operand.vmem [shape: f32[1,8], index: 2, kind: input, shape index: {}]   ;;  %s5334_s3 = inlined_call_operand.vmem [shape: bf16[9,8,8], index: 3, kind: input, shape index: {}]   ;;  %s5335_s4 = inlined_call_operand.vmem [shape: f32[1,8], index: 4, kind: input, shape index: {}]   ;;  %s5336_s5 = inlined_call_operand.vmem [shape: bf16[4,8], index: 5, kind: input, shape index: {}]   ;;  %s5337_s6 = inlined_call_operand.vmem [shape: f32[1,8], index: 6, kind: input, shape index: {}]   ;;  %s5338_s7 = inlined_call_operand.hbm [shape: f32[2,8,8,8], index: 7, kind: output, shape index: {}]  }
   0x1   :  { %14 = vsyncpa [#allocation4 + $0x1], 0  ;;  %s4564_s24 = smov 0   ;;  %s4566_s25 = smov 0  }
   0x2   :  { %s4568_s26 = smov 0   ;;  %s4570_s27 = smov 0  }
   0x3 LB: > { %s4585_s28 = sadd.s32 4294967295, %s4518_s27   ;;  %s3611_s29 = sadd.s32 4294967294, %s4518_s27   ;;  %s4518_s27 = sphi %s4570_s27, %s5352_s27   ;;  %s4514_s26 = sphi %s4568_s26, %s5351_s26   ;;  %s4510_s25 = sphi %s4566_s25, %s5350_s25   ;;  %s4506_s24 = sphi %s4564_s24, %s5349_s24  }
   0x4   : > { %s4589_s30 = sadd.s32 1, %s4518_s27   ;;  %s179_s8 = sadd.s32 1, %s4514_s26 }
   0x5   : > { %s176_s9 = ssub.s32 %s4518_s27, %s4589_s30  ;;  %p189_p0 = scmp.ne.s32.totalorder %s4514_s26, %s4510_s25 }
   0x6   : > { %p177_p1 = scmp.eq.s32.totalorder %s176_s9, 0  ;;  %p190_p2 = scmp.eq.s32.totalorder %s4585_s28, 1 }
   0x7   : > { %p195_p3 = scmp.ne.s32.totalorder %s4510_s25, %s4506_s24  ;;  %p196_p4 = scmp.eq.s32.totalorder %s3611_s29, 1 }
   0x8   : > { %s4600_s10 = scalar_select %p177_p1, %s4514_s26, %s179_s8  }
   0x9   : > { %p4602_p5 = por %p190_p2, %p189_p0  ;;  %p4606_p6 = por %p196_p4, %p195_p3 }
   0xa   : > { %p3614_p7 = scmp.ge.s32.totalorder %s4518_s27, 1  ;;  %p240_p8 = scmp.lt.s32.totalorder %s4518_s27, 3 }
   0xc   : > { %p241_p9 = pnand %p3614_p7, %p240_p8 }
   0xd   : > { %v3625_v0 = vld [vmem:[%s5332_s1 + $0x2] sm:$0x3] (!%p241_p9)  ;;  %vm331_vm0 = vcmask (!%p241_p9), 1041408   ;;  %p272_p10 = scmp.lt.s32.totalorder (!%p241_p9), %s4585_s28, 1  ;;  %v286_v2 = vld [vmem:[%s5332_s1] sm:$0x3] (!%p241_p9) }
   0xe   : > { %244 = sbr.rel (%p241_p9) target bundleno = 798 (0x31e), region = 48  ;;  %4353 = vmatprep.subr.msk.bf16.mxu0 (!%p241_p9), %vm331_vm0, %v3625_v0  ;;  %v333_v1 = vsel (!%p241_p9), %vm331_vm0, %v3625_v0, 0  ;;  %vm318_vm1 = vcmask (!%p241_p9), 31744   ;;  %v433_v3 = vsel (!%p241_p9), %vm331_vm0, %v286_v2, 0  ;;  %v3642_v5 = vld [vmem:[%s5332_s1 + $0x4] sm:$0x3] (!%p241_p9) }
   0xf   : > { %4010 = vmatpush3.bf16.msra.mxu0 (!%p241_p9), %v333_v1  ;;  %vm516_vm2 = vsmask.f32 (!%p241_p9), 3328  ;;  %vm517_vm3 = vsmask.f32 (!%p241_p9), 7440  ;;  %v658_v50 = vsel (!%p241_p9), %vm331_vm0, %v3642_v5, 0  ;;  %vm1692_vm5 = vcmask (!%p241_p9), 60416  }
  0x10   : > { %4354 = vmatprep.subr.msk.bf16.mxu0 (!%p241_p9), %vm331_vm0, %v286_v2  ;;  %vm4656_vm4 = vmor (!%p241_p9), %vm516_vm2, %vm517_vm3  ;;  %v3659_v55 = vld [vmem:[%s5332_s1 + $0x6] sm:$0x3] (!%p241_p9)  ;;  %vm1694_vm6 = vcmask (!%p241_p9), 57344   ;;  %vm2037_vm7 = vcmask (!%p241_p9), 1043456   ;;  %vm1828_vm8 = vsmask.f32 (!%p241_p9), 7938 }
  0x11   : > { %vm1834_vm9 = vsmask.f32 (!%p241_p9), 256  ;;  %vm4883_vm10 = vmand (!%p241_p9), %vm1692_vm5, %vm1828_vm8  ;;  %vm2024_vm12 = vcmask (!%p241_p9), 64512   ;;  %vm2230_vm13 = vcmask (!%p241_p9), 1042432   ;;  %vm2231_vm14 = vcmask (!%p241_p9), 1046532   ;;  %s269_s20 = sand.u32 (!%p241_p9), 1, %s4510_s25  }
  0x12   : > { %vm4890_vm11 = vmand (!%p241_p9), %vm1694_vm6, %vm1834_vm9  ;;  %s3913_s8 = sshll.u32 (!%p241_p9), %s4585_s28, 10 }
  0x13   : > { %vm5030_vm15 = vmor (!%p241_p9), %vm2230_vm13, %vm2231_vm14  ;;  %s5281_s15 = scalar_lea.hbm (!%p241_p9), %s5338_s7, %s3913_s8 }
  0x15   : > { %s273_s17 = scalar_select %p272_p10, %s4585_s28, 1 }
  0x16   : > { %s5290_s28 = scalar_lea.sflag [#allocation4], %s269_s20 }
  0x17   : > { %s4373_s18 = smul.u32 288, %s273_s17  ;;  %s4521_s17 = smov [#allocation3]  }
  0x19   : > { %s4626_s21 = scalar_lea.vmem %s5331_s0, %s4373_s18  ;;  %s4460_s18 = sshll.u32 %s4521_s17, 4  ;;  %s4461_s18 = int_to_ptr.vmem [resolvable:$false] %s4460_s18 }
  0x1a   : > { %v4416_v4 = vld [vmem:[%s4626_s21 + $0x48] ss:$8 sps:$4 sm:$0xff]   ;;  %v4417_v6 = vld [vmem:[%s4626_s21 + $0x58] ss:$8 sps:$4 sm:$0xff]   ;;  %v501_v11 = vld [vmem:[%s4626_s21 + $0x4] sm:$0x1] }
  0x1b   : > { %4011 = vmatprep.mubr.msk.bf16.mxu0 %vm318_vm1, %v4416_v4  ;;  %v4418_v7 = vld [vmem:[%s4626_s21 + $0x68] ss:$8 sps:$4 sm:$0xff]   ;;  %v4419_v8 = vld [vmem:[%s4626_s21 + $0x78] ss:$8 sps:$4 sm:$0xff]   ;;  %v503_v13 = vld [vmem:[%s4626_s21 + $0xc] sm:$0x1] }
  0x1c   : > { %4012 = vmatmul.mubr.msk.bf16.vlgmr.msra.gmra.mrb[0].mxu0 %vm318_vm1, %v4417_v6  ;;  %v4420_v9 = vld [vmem:[%s4626_s21] ss:$8 sps:$4 sm:$0xff]   ;;  %v529_v17 = vshll.u32 %v501_v11, 16  ;;  %v504_v19 = vld [vmem:[%s4626_s21 + $0x10] sm:$0xf]  ;;  %v543_v23 = vshll.u32 %v503_v13, 16 }
  0x1d   : > { %4020 = vmatpush3.bf16.msra.mxu0 %v433_v3  ;;  %4015 = vmatprep.mubr.msk.bf16.mxu0 %vm318_vm1, %v4418_v7  ;;  %v500_v10 = vld [vmem:[%s4626_s21] sm:$0xf]  ;;  %v502_v12 = vld [vmem:[%s4626_s21 + $0x8] sm:$0xf]  ;;  %v506_v24 = vld [vmem:[%s4626_s21 + $0x18] sm:$0xf] }
  0x1e   : > { %4355 = vmatprep.subr.msk.bf16.mxu0 %vm331_vm0, %v3642_v5  ;;  %v520_v14 = vshrl.u32 %v500_v10, 16  ;;  %v523_v15 = vshll.u32 %v500_v10, 16  ;;  %v534_v16 = vshrl.u32 %v502_v12, 16  ;;  %v537_v18 = vshll.u32 %v502_v12, 16  ;;  %v4421_v28 = vld [vmem:[%s4626_s21 + $0x10] ss:$8 sps:$4 sm:$0xff]  }
  0x1f   : > { %v548_v26 = vshrl.u32 %v504_v19, 16  ;;  %v551_v27 = vshll.u32 %v504_v19, 16  ;;  %v505_v30 = vld [vmem:[%s4626_s21 + $0x14] sm:$0x1]  ;;  %v562_v31 = vshrl.u32 %v506_v24, 16  ;;  %v565_v32 = vshll.u32 %v506_v24, 16 }
  0x20   : > { %v522_v20 = vrot.slane %v520_v14, 4  ;;  %v525_v21 = vrot.slane %v523_v15, 5  ;;  %v536_v22 = vrot.slane %v534_v16, 4  ;;  %v539_v25 = vrot.slane %v537_v18, 5  ;;  %v508_v33 = vld [vmem:[%s4626_s21 + $0x20] sm:$0xf] }
  0x21   : > { %v4422_v34 = vld [vmem:[%s4626_s21 + $0x20] ss:$8 sps:$4 sm:$0xff]   ;;  %v531_v35 = vrot.slane %v529_v17, 5  ;;  %v507_v37 = vld [vmem:[%s4626_s21 + $0x1c] sm:$0x1]  ;;  %v550_v38 = vrot.slane %v548_v26, 4 }
  0x22   : > { %v526_v29 = vor.u32 %v525_v21, %v522_v20  ;;  %v540_v36 = vor.u32 %v539_v25, %v536_v22  ;;  %v553_v39 = vrot.slane %v551_v27, 5  ;;  %v545_v42 = vrot.slane %v543_v23, 5  ;;  %v510_v45 = vld [vmem:[%s4626_s21 + $0x28] sm:$0xf]  ;;  %v509_v48 = vld [vmem:[%s4626_s21 + $0x24] sm:$0x1] }
  0x23   : > { %v564_v43 = vrot.slane %v562_v31, 4  ;;  %v567_v44 = vrot.slane %v565_v32, 5  ;;  %v557_v47 = vshll.u32 %v505_v30, 16  ;;  %v576_v49 = vshrl.u32 %v508_v33, 16  ;;  %v511_v52 = vld [vmem:[%s4626_s21 + $0x2c] sm:$0x1] }
  0x24   : > { %4016 = vmatmul.mubr.msk.bf16.gmra.mrb[4].mxu0 %vm318_vm1, %v4419_v8  ;;  %v527_v41 = vrot.slane %v526_v29, 4  ;;  %v541_v46 = vrot.slane %v540_v36, 4  ;;  %v571_v51 = vshll.u32 %v507_v37, 16  ;;  %v579_v53 = vshll.u32 %v508_v33, 16  ;;  %v512_v59 = vld [vmem:[%s4626_s21 + $0x30] sm:$0xf] }
  0x25   : > { %4021 = vmatprep.mubr.msk.bf16.mxu0 %vm318_vm1, %v4420_v9  ;;  %v554_v56 = vor.u32 %v553_v39, %v550_v38  ;;  %v578_v57 = vrot.slane %v576_v49, 4  ;;  %v590_v58 = vshrl.u32 %v510_v45, 16  ;;  %v568_v61 = vor.u32 %v567_v44, %v564_v43  ;;  %v514_v0 = vld [vmem:[%s4626_s21 + $0x38] sm:$0xf]  ;;  %v513_v13 = vld [vmem:[%s4626_s21 + $0x34] sm:$0x1] }
  0x26   : > { %v532_v54 = vsel %vm4656_vm4, %v527_v41, %v531_v35  ;;  %v546_v60 = vsel %vm4656_vm4, %v541_v46, %v545_v42  ;;  %v581_v62 = vrot.slane %v579_v53, 5  ;;  %v585_v63 = vshll.u32 %v509_v48, 16  ;;  %v4423_v5 = vld [vmem:[%s4626_s21 + $0x30] ss:$8 sps:$4 sm:$0xff]   ;;  %v515_v19 = vld [vmem:[%s4626_s21 + $0x3c] sm:$0x1] }
  0x27   : > { %v559_v1 = vrot.slane %v557_v47, 5  ;;  %v592_v2 = vrot.slane %v590_v58, 4  ;;  %v593_v3 = vshll.u32 %v510_v45, 16  ;;  %v599_v4 = vshll.u32 %v511_v52, 16  ;;  %v3676_v43 = vld [vmem:[%s5332_s1 + $0x8] sm:$0x3] }
  0x28   : > { %v573_v6 = vrot.slane %v571_v51, 5  ;;  %v582_v7 = vor.u32 %v581_v62, %v578_v57  ;;  %v604_v8 = vshrl.u32 %v512_v59, 16  ;;  %v607_v9 = vshll.u32 %v512_v59, 16  ;;  %v4424_v47 = vld [vmem:[%s4626_s21 + $0x90] ss:$8 sps:$4 sm:$0xff]   ;;  %s4462_s19 = scalar_lea.vmem %s4461_s18, 2048 }
  0x29   : > { %v3643_v10 = vcombine.low %v532_v54, %v546_v60  ;;  %v555_v11 = vrot.slane %v554_v56, 4  ;;  %v595_v12 = vrot.slane %v593_v3, 5  ;;  %v569_v14 = vrot.slane %v568_v61, 4  ;;  %v4425_v48 = vld [vmem:[%s4626_s21 + $0xa0] ss:$8 sps:$4 sm:$0xff]  }
  0x2a   : > { %v587_v15 = vrot.slane %v585_v63, 5  ;;  %v601_v16 = vrot.slane %v599_v4, 5  ;;  %v618_v17 = vshrl.u32 %v514_v0, 16  ;;  %v606_v20 = vrot.slane %v604_v8, 4  ;;  %v3685_v49 = vld [vmem:[%s4626_s21 + $0x90] sm:$0xf] }
  0x2b   : > { %v596_v18 = vor.u32 %v595_v12, %v592_v2  ;;  %v609_v21 = vrot.slane %v607_v9, 5  ;;  %v621_v22 = vshll.u32 %v514_v0, 16  ;;  %v583_v23 = vrot.slane %v582_v7, 4  ;;  %v4426_v51 = vld [vmem:[%s4626_s21 + $0xb0] ss:$8 sps:$4 sm:$0xff]  }
  0x2c   : > { %4022 = vmatmul.mubr.msk.bf16.vlgmr.msra.gmra.mrb[0].mxu0 %vm318_vm1, %v4421_v28  ;;  %v620_v24 = vrot.slane %v618_v17, 4  ;;  %v560_v27 = vsel %vm4656_vm4, %v555_v11, %v559_v1  ;;  %v613_v28 = vshll.u32 %v513_v13, 16  ;;  %v574_v29 = vsel %vm4656_vm4, %v569_v14, %v573_v6  ;;  %v3687_v52 = vld [vmem:[%s4626_s21 + $0x98] sm:$0xf]  ;;  %v3701_v53 = vld [vmem:[%s5332_s1 + $0xa] sm:$0x3] }
  0x2d   : > { %4030 = vmatpush3.bf16.msra.mxu0 %v658_v50  ;;  %4025 = vmatprep.mubr.msk.bf16.mxu0 %vm318_vm1, %v4422_v34  ;;  %v597_v25 = vrot.slane %v596_v18, 4  ;;  %v623_v26 = vrot.slane %v621_v22, 5  ;;  %v610_v30 = vor.u32 %v609_v21, %v606_v20  ;;  %v627_v32 = vshll.u32 %v515_v19, 16  ;;  %v3686_v54 = vld [vmem:[%s4626_s21 + $0x94] sm:$0x1] }
  0x2e   : > { %4356 = vmatprep.subr.msk.bf16.mxu0 %vm331_vm0, %v3659_v55  ;;  %v588_v33 = vsel %vm4656_vm4, %v583_v23, %v587_v15  ;;  %v3644_v35 = vcombine.low %v560_v27, %v574_v29  ;;  %v615_v36 = vrot.slane %v613_v28, 5  ;;  %v777_v42 = vsel %vm331_vm0, %v3659_v55, 0  ;;  %v3688_v55 = vld [vmem:[%s4626_s21 + $0x9c] sm:$0x1]  ;;  %v4427_v60 = vld [vmem:[%s4626_s21 + $0xc0] ss:$8 sps:$4 sm:$0xff]  }
  0x2f   : > { %v624_v31 = vor.u32 %v623_v26, %v620_v24  ;;  %v602_v34 = vsel %vm4656_vm4, %v597_v25, %v601_v16  ;;  %v611_v38 = vrot.slane %v610_v30, 4  ;;  %v629_v41 = vrot.slane %v627_v32, 5  ;;  %v3689_v63 = vld [vmem:[%s4626_s21 + $0xa0] sm:$0xf]  ;;  %v3693_v8 = vld [vmem:[%s4626_s21 + $0xb0] sm:$0xf] }
  0x30   : > { %v3645_v37 = vcombine.low %v588_v33, %v602_v34  ;;  %v896_v50 = vsel %vm331_vm0, %v3676_v43, 0  ;;  %v988_v56 = vshrl.u32 %v3685_v49, 16  ;;  %v991_v57 = vshll.u32 %v3685_v49, 16  ;;  %v4428_v0 = vld [vmem:[%s4626_s21 + $0xd8] ss:$8 sps:$4 sm:$0xff]  }
  0x31   : > { %v625_v39 = vrot.slane %v624_v31, 4  ;;  %v616_v44 = vsel %vm4656_vm4, %v611_v38, %v615_v36  ;;  %v1002_v58 = vshrl.u32 %v3687_v52, 16  ;;  %v1005_v59 = vshll.u32 %v3687_v52, 16  ;;  %v3695_v9 = vld [vmem:[%s4626_s21 + $0xb8] sm:$0xf] }
  0x32   : > { %v997_v61 = vshll.u32 %v3686_v54, 16  ;;  %v1011_v62 = vshll.u32 %v3688_v55, 16  ;;  %v990_v1 = vrot.slane %v988_v56, 4  ;;  %v993_v2 = vrot.slane %v991_v57, 5  ;;  %v3690_v12 = vld [vmem:[%s4626_s21 + $0xa4] sm:$0x1] }
  0x33   : > { %v630_v45 = vsel %vm4656_vm4, %v625_v39, %v629_v41  ;;  %v1004_v3 = vrot.slane %v1002_v58, 4  ;;  %v1007_v4 = vrot.slane %v1005_v59, 5  ;;  %v1016_v6 = vshrl.u32 %v3689_v63, 16  ;;  %v3692_v13 = vld [vmem:[%s4626_s21 + $0xac] sm:$0x1] }
  0x34   : > { %4026 = vmatmul.mubr.msk.bf16.gmra.mrb[4].mxu0 %vm318_vm1, %v4423_v5  ;;  %v3646_v46 = vcombine.low %v616_v44, %v630_v45  ;;  %v3691_v5 = vld [vmem:[%s4626_s21 + $0xa8] sm:$0xf]  ;;  %v1019_v7 = vshll.u32 %v3689_v63, 16  ;;  %v1126_v16 = vsel %vm331_vm0, %v3701_v53, 0  ;;  %v999_v17 = vrot.slane %v997_v61, 5 }
  0x35   : > { %4031 = vmatprep.mubr.msk.bf16.mxu0 %vm318_vm1, %v3643_v10  ;;  %v994_v10 = vor.u32 %v993_v2, %v990_v1  ;;  %v1008_v11 = vor.u32 %v1007_v4, %v1004_v3  ;;  %v1030_v14 = vshrl.u32 %v3691_v5, 16  ;;  %v1033_v15 = vshll.u32 %v3691_v5, 16  ;;  %v4429_v27 = vld [vmem:[%s4626_s21 + $0xe8] ss:$8 sps:$4 sm:$0xff]   ;;  %v4430_v32 = vld [vmem:[%s4626_s21 + $0xf8] ss:$8 sps:$4 sm:$0xff]  }
  0x36   : > { %v1013_v18 = vrot.slane %v1011_v62, 5  ;;  %v1044_v19 = vshrl.u32 %v3693_v8, 16  ;;  %v1047_v20 = vshll.u32 %v3693_v8, 16  ;;  %v1058_v21 = vshrl.u32 %v3695_v9, 16  ;;  %v3718_v33 = vld [vmem:[%s5332_s1 + $0xc] sm:$0x3] }
  0x37   : > { %v1061_v22 = vshll.u32 %v3695_v9, 16  ;;  %v1018_v23 = vrot.slane %v1016_v6, 4  ;;  %v1021_v24 = vrot.slane %v1019_v7, 5  ;;  %v1025_v25 = vshll.u32 %v3690_v12, 16  ;;  %v3697_v34 = vld [vmem:[%s4626_s21 + $0xc0] sm:$0xf] }
  0x38   : > { %v1039_v26 = vshll.u32 %v3692_v13, 16  ;;  %v995_v28 = vrot.slane %v994_v10, 4  ;;  %v1009_v29 = vrot.slane %v1008_v11, 4  ;;  %v1032_v30 = vrot.slane %v1030_v14, 4  ;;  %v3699_v39 = vld [vmem:[%s4626_s21 + $0xc8] sm:$0xf] }
  0x39   : > { %v1035_v31 = vrot.slane %v1033_v15, 5  ;;  %v1049_v36 = vrot.slane %v1047_v20, 5  ;;  %v1063_v38 = vrot.slane %v1061_v22, 5  ;;  %v1022_v41 = vor.u32 %v1021_v24, %v1018_v23  ;;  %v3696_v44 = vld [vmem:[%s4626_s21 + $0xbc] sm:$0x1] }
  0x3a   : > { %v1000_v45 = vsel %vm4656_vm4, %v995_v28, %v999_v17  ;;  %v1072_v49 = vshrl.u32 %v3697_v34, 16  ;;  %v1089_v52 = vshll.u32 %v3699_v39, 16  ;;  %v1067_v57 = vshll.u32 %v3696_v44, 16  ;;  %v3698_v58 = vld [vmem:[%s4626_s21 + $0xc4] sm:$0x1] }
  0x3b   : > { %v3700_v62 = vld [vmem:[%s4626_s21 + $0xcc] sm:$0x1]  ;;  %v1081_v8 = vshll.u32 %v3698_v58, 16  ;;  %v3735_v22 = vld [vmem:[%s5332_s1 + $0xe] sm:$0x3] }
  0x3c   : > { %4032 = vmatmul.mubr.msk.bf16.vlgmr.msra.gmra.mrb[0].mxu0 %vm318_vm1, %v3644_v35  ;;  %v1046_v35 = vrot.slane %v1044_v19, 4  ;;  %v1074_v63 = vrot.slane %v1072_v49, 4  ;;  %v1091_v2 = vrot.slane %v1089_v52, 5  ;;  %v1069_v6 = vrot.slane %v1067_v57, 5  ;;  %v3744_v28 = vld [vmem:[%s4626_s21 + $0x8] sm:$0xf] }
  0x3d   : > { %4040 = vmatpush3.bf16.msra.mxu0 %v777_v42  ;;  %4035 = vmatprep.mubr.msk.bf16.mxu0 %vm318_vm1, %v3645_v37  ;;  %v1060_v37 = vrot.slane %v1058_v21, 4  ;;  %v1027_v42 = vrot.slane %v1025_v25, 5  ;;  %v1095_v12 = vshll.u32 %v3700_v62, 16  ;;  %v1245_v21 = vsel %vm331_vm0, %v3718_v33, 0  ;;  %v3752_v52 = vld [vmem:[%s4626_s21 + $0x28] sm:$0xf] }
  0x3e   : > { %4357 = vmatprep.subr.msk.bf16.mxu0 %vm331_vm0, %v3676_v43  ;;  %v3694_v43 = vld [vmem:[%s4626_s21 + $0xb4] sm:$0x1]  ;;  %v1050_v54 = vor.u32 %v1049_v36, %v1046_v35  ;;  %v4437_v58 = vld [vmem:[%s4626_s21 + $0x60] ss:$8 sps:$4 sm:$0xff]  }
  0x3f   : > { %v1053_v55 = vshll.u32 %v3694_v43, 16  ;;  %v1064_v56 = vor.u32 %v1063_v38, %v1060_v37  ;;  %v1097_v20 = vrot.slane %v1095_v12, 5  ;;  %v4435_v37 = vld [vmem:[%s4626_s21 + $0x38] ss:$8 sps:$4 sm:$0xff]   ;;  %v3745_v38 = vld [vmem:[%s4626_s21 + $0xc] sm:$0x1] }
  0x40   : > { %v1051_v3 = vrot.slane %v1050_v54, 4 }
  0x41   : > { %v1055_v4 = vrot.slane %v1053_v55, 5  ;;  %v1065_v5 = vrot.slane %v1064_v56, 4 }
  0x43   : > { %v1056_v13 = vsel %vm4656_vm4, %v1051_v3, %v1055_v4  ;;  %v1070_v14 = vsel %vm4656_vm4, %v1065_v5, %v1069_v6  ;;  %v3751_v5 = vld [vmem:[%s4626_s21 + $0x24] sm:$0x1] }
  0x44   : > { %4036 = vmatmul.mubr.msk.bf16.gmra.mrb[4].mxu0 %vm318_vm1, %v3646_v46  ;;  %v1014_v46 = vsel %vm4656_vm4, %v1009_v29, %v1013_v18  ;;  %v3704_v17 = vcombine.low %v1056_v13, %v1070_v14  ;;  %v4434_v29 = vld [vmem:[%s4626_s21 + $0x28] ss:$8 sps:$4 sm:$0xff]  }
  0x45   : > { %4041 = vmatprep.mubr.msk.bf16.mxu0 %vm318_vm1, %v4424_v47  ;;  %v1036_v47 = vor.u32 %v1035_v31, %v1032_v30  ;;  %v3702_v59 = vcombine.low %v1000_v45, %v1014_v46  ;;  %v3746_v30 = vld [vmem:[%s4626_s21 + $0x10] sm:$0xf]  ;;  %v1364_v31 = vsel %vm331_vm0, %v3735_v22, 0  ;;  %v3748_v45 = vld [vmem:[%s4626_s21 + $0x18] sm:$0xf] }
  0x46   : > { %v1470_v35 = vshrl.u32 %v3746_v30, 16  ;;  %v1473_v36 = vshll.u32 %v3746_v30, 16  ;;  %v4436_v46 = vld [vmem:[%s4626_s21 + $0x50] ss:$8 sps:$4 sm:$0xff]   ;;  %v1487_v55 = vshll.u32 %v3748_v45, 16 }
  0x47   : > { %v1037_v61 = vrot.slane %v1036_v47, 4  ;;  %v3750_v47 = vld [vmem:[%s4626_s21 + $0x20] sm:$0xf] }
  0x48   : > { %v1472_v43 = vrot.slane %v1470_v35, 4  ;;  %v1475_v44 = vrot.slane %v1473_v36, 5  ;;  %v1498_v56 = vshrl.u32 %v3750_v47, 16  ;;  %v1501_v57 = vshll.u32 %v3750_v47, 16 }
  0x49   : > { %v1489_v6 = vrot.slane %v1487_v55, 5 }
  0x4a   : > { %v1476_v54 = vor.u32 %v1475_v44, %v1472_v43 }
  0x4c   : > { %4042 = vmatmul.mubr.msk.bf16.vlgmr.msra.gmra.mrb[0].mxu0 %vm318_vm1, %v4425_v48  ;;  %v1041_v48 = vrot.slane %v1039_v26, 5  ;;  %v4432_v26 = vld [vmem:[%s4626_s21 + $0x8] ss:$8 sps:$4 sm:$0xff]   ;;  %v1477_v4 = vrot.slane %v1476_v54, 4 }
  0x4d   : > { %4050 = vmatpush3.bf16.msra.mxu0 %v896_v50  ;;  %4045 = vmatprep.mubr.msk.bf16.mxu0 %vm318_vm1, %v4426_v51  ;;  %v1075_v50 = vshll.u32 %v3697_v34, 16  ;;  %v1086_v51 = vshrl.u32 %v3699_v39, 16  ;;  %v1459_v34 = vshll.u32 %v3744_v28, 16 }
  0x4e   : > { %4358 = vmatprep.subr.msk.bf16.mxu0 %vm331_vm0, %v3701_v53  ;;  %v4431_v53 = vld [vmem:[%s4626_s21 + $0x108] ss:$8 sps:$4 sm:$0xff]   ;;  %v1042_v9 = vsel %vm4656_vm4, %v1037_v61, %v1041_v48  ;;  %v1465_v48 = vshll.u32 %v3745_v38, 16 }
  0x4f   : > { %v1088_v1 = vrot.slane %v1086_v51, 4  ;;  %v1484_v51 = vshrl.u32 %v3748_v45, 16 }
  0x51   : > { %v1092_v11 = vor.u32 %v1091_v2, %v1088_v1  ;;  %v3749_v2 = vld [vmem:[%s4626_s21 + $0x1c] sm:$0x1]  ;;  %v1486_v3 = vrot.slane %v1484_v51, 4 }
  0x53   : > { %v1093_v19 = vrot.slane %v1092_v11, 4  ;;  %v3756_v11 = vld [vmem:[%s4626_s21 + $0x38] sm:$0xf] }
  0x54   : > { %4046 = vmatmul.mubr.msk.bf16.gmra.mrb[4].mxu0 %vm318_vm1, %v4427_v60  ;;  %v1023_v60 = vrot.slane %v1022_v41, 4  ;;  %v1461_v41 = vrot.slane %v1459_v34, 5  ;;  %v4439_v34 = vld [vmem:[%s4626_s21 + $0x80] ss:$8 sps:$4 sm:$0xff]  }
  0x55   : > { %4051 = vmatprep.mubr.msk.bf16.mxu0 %vm318_vm1, %v4428_v0  ;;  %v1077_v0 = vrot.slane %v1075_v50, 5  ;;  %v1098_v24 = vsel %vm4656_vm4, %v1093_v19, %v1097_v20  ;;  %v3753_v19 = vld [vmem:[%s4626_s21 + $0x2c] sm:$0x1]  ;;  %v3755_v20 = vld [vmem:[%s4626_s21 + $0x34] sm:$0x1] }
  0x56   : > { %v1028_v7 = vsel %vm4656_vm4, %v1023_v60, %v1027_v42  ;;  %v3747_v42 = vld [vmem:[%s4626_s21 + $0x14] sm:$0x1]  ;;  %v1515_v60 = vshll.u32 %v3752_v52, 16  ;;  %v1521_v30 = vshll.u32 %v3753_v19, 16 }
  0x57   : > { %v1078_v10 = vor.u32 %v1077_v0, %v1074_v63  ;;  %v3703_v15 = vcombine.low %v1028_v7, %v1042_v9  ;;  %v1479_v50 = vshll.u32 %v3747_v42, 16  ;;  %v1467_v0 = vrot.slane %v1465_v48, 5 }
  0x58   : > { %v1500_v7 = vrot.slane %v1498_v56, 4  ;;  %v1517_v13 = vrot.slane %v1515_v60, 5 }
  0x59   : > { %v1079_v18 = vrot.slane %v1078_v10, 4  ;;  %v1481_v1 = vrot.slane %v1479_v50, 5  ;;  %v4438_v10 = vld [vmem:[%s4626_s21 + $0x70] ss:$8 sps:$4 sm:$0xff]  }
  0x5c   : > { %4052 = vmatmul.mubr.msk.bf16.vlgmr.msra.gmra.mrb[0].mxu0 %vm318_vm1, %v4429_v27  ;;  %v4433_v27 = vld [vmem:[%s4626_s21 + $0x18] ss:$8 sps:$4 sm:$0xff]  }
  0x5d   : > { %4060 = vmatpush3.bf16.msra.mxu0 %v1126_v16  ;;  %4055 = vmatprep.mubr.msk.bf16.mxu0 %vm318_vm1, %v4430_v32  ;;  %v1083_v16 = vrot.slane %v1081_v8, 5  ;;  %v3760_v32 = vld [vmem:[%s5332_s1 + $0x10] sm:$0x3]  ;;  %v1503_v8 = vrot.slane %v1501_v57, 5 }
  0x5e   : > { %4359 = vmatprep.subr.msk.bf16.mxu0 %vm331_vm0, %v3718_v33  ;;  %v1456_v33 = vshrl.u32 %v3744_v28, 16  ;;  %v1594_v9 = vsel %vm331_vm0, %v3760_v32, 0 }
  0x5f   : > { %v1084_v23 = vsel %vm4656_vm4, %v1079_v18, %v1083_v16  ;;  %v3758_v16 = vld [vmem:[%s4626_s21 + $0x40] sm:$0xf]  ;;  %v1507_v18 = vshll.u32 %v3751_v5, 16 }
  0x60   : > { %v3705_v25 = vcombine.low %v1084_v23, %v1098_v24  ;;  %v1458_v39 = vrot.slane %v1456_v33, 4  ;;  %v1490_v23 = vor.u32 %v1489_v6, %v1486_v3  ;;  %v1504_v24 = vor.u32 %v1503_v8, %v1500_v7  ;;  %v4855_v6 = vld [vmem:[%s5334_s3] sm:$0xf] }
  0x61   : > { %v1557_v28 = vshll.u32 %v3758_v16, 16  ;;  %v1509_v38 = vrot.slane %v1507_v18, 5  ;;  %v4520_v3 = vmov 0   ;;  %v4864_v8 = vld [vmem:[%s5333_s2] ss:$0 sm:$0xff] }
  0x62   : > { %v1462_v49 = vor.u32 %v1461_v41, %v1458_v39  ;;  %v1491_v36 = vrot.slane %v1490_v23, 4  ;;  %v3757_v39 = vld [vmem:[%s4626_s21 + $0x3c] sm:$0x1]  ;;  %1700 = vst.msk [vmem:[#allocation2 + $0x18] sm:$0xf] %vm1692_vm5, %v4520_v3 }
  0x63   : > { %v1559_v44 = vrot.slane %v1557_v28, 5  ;;  %v1549_v51 = vshll.u32 %v3757_v39, 16  ;;  %1701 = vst.msk [vmem:[#allocation2 + $0x1c] sm:$0x1] %vm1694_vm6, %v4520_v3  ;;  %1695 = vst.msk [vmem:[#allocation2 + $0x4] sm:$0x1] %vm1694_vm6, %v4520_v3 }
  0x64   : > { %4056 = vmatmul.mubr.msk.bf16.gmra.mrb[4].mxu0 %vm318_vm1, %v4431_v53  ;;  %v3754_v53 = vld [vmem:[%s4626_s21 + $0x30] sm:$0xf]  ;;  %v1463_v63 = vrot.slane %v1462_v49, 4  ;;  %v3759_v49 = vld [vmem:[%s4626_s21 + $0x44] sm:$0x1] }
  0x65   : > { %4061 = vmatprep.mubr.msk.bf16.mxu0 %vm318_vm1, %v3702_v59  ;;  %v1512_v59 = vshrl.u32 %v3752_v52, 16  ;;  %v1526_v61 = vshrl.u32 %v3754_v53, 16  ;;  %v1529_v62 = vshll.u32 %v3754_v53, 16  ;;  %v1563_v55 = vshll.u32 %v3759_v49, 16  ;;  %1693 = vst.msk [vmem:[#allocation2] sm:$0xf] %vm1692_vm5, %v4520_v3 }
  0x66   : > { %1696 = vst.msk [vmem:[#allocation2 + $0x8] sm:$0xf] %vm1692_vm5, %v4520_v3  ;;  %1698 = vst.msk [vmem:[#allocation2 + $0x10] sm:$0xf] %vm1692_vm5, %v4520_v3 }
  0x67   : > { %v1514_v12 = vrot.slane %v1512_v59, 4  ;;  %v1528_v14 = vrot.slane %v1526_v61, 4  ;;  %v1551_v59 = vrot.slane %v1549_v51, 5  ;;  %1697 = vst.msk [vmem:[#allocation2 + $0xc] sm:$0x1] %vm1694_vm6, %v4520_v3 }
  0x68   : > { %1699 = vst.msk [vmem:[#allocation2 + $0x14] sm:$0x1] %vm1694_vm6, %v4520_v3  ;;  %1703 = vst.msk [vmem:[#allocation2 + $0x24] sm:$0x1] %vm1694_vm6, %v4520_v3 }
  0x69   : > { %1702 = vst.msk [vmem:[#allocation2 + $0x20] sm:$0xf] %vm1692_vm5, %v4520_v3  ;;  %1704 = vst.msk [vmem:[#allocation2 + $0x28] sm:$0xf] %vm1692_vm5, %v4520_v3 }
  0x6a   : > { %1705 = vst.msk [vmem:[#allocation2 + $0x2c] sm:$0x1] %vm1694_vm6, %v4520_v3  ;;  %1707 = vst.msk [vmem:[#allocation2 + $0x34] sm:$0x1] %vm1694_vm6, %v4520_v3 }
  0x6b   : > { %1706 = vst.msk [vmem:[#allocation2 + $0x30] sm:$0xf] %vm1692_vm5, %v4520_v3  ;;  %1708 = vst.msk [vmem:[#allocation2 + $0x38] sm:$0xf] %vm1692_vm5, %v4520_v3 }
  0x6c   : > { %4062 = vmatmul.mubr.msk.bf16.vlgmr.msra.gmra.mrb[0].mxu0 %vm318_vm1, %v3703_v15  ;;  %v1531_v15 = vrot.slane %v1529_v62, 5  ;;  %1709 = vst.msk [vmem:[#allocation2 + $0x3c] sm:$0x1] %vm1694_vm6, %v4520_v3  ;;  %1711 = vst.msk [vmem:[#allocation2 + $0x44] sm:$0x1] %vm1694_vm6, %v4520_v3 }
  0x6d   : > { %4070 = vmatpush3.bf16.msra.mxu0 %v1245_v21  ;;  %4065 = vmatprep.mubr.msk.bf16.mxu0 %vm318_vm1, %v3704_v17  ;;  %v1493_v17 = vshll.u32 %v3749_v2, 16  ;;  %v1468_v21 = vsel %vm4656_vm4, %v1463_v63, %v1467_v0  ;;  %v1565_v63 = vrot.slane %v1563_v55, 5  ;;  %1710 = vst.msk [vmem:[#allocation2 + $0x40] sm:$0xf] %vm1692_vm5, %v4520_v3  ;;  %1712 = vst.msk [vmem:[#allocation2 + $0x48] sm:$0xf] %vm1692_vm5, %v4520_v3 }
  0x6e   : > { %4360 = vmatprep.subr.msk.bf16.mxu0 %vm331_vm0, %v3735_v22  ;;  %v1482_v22 = vsel %vm4656_vm4, %v1477_v4, %v1481_v1  ;;  %1713 = vst.msk [vmem:[#allocation2 + $0x4c] sm:$0x1] %vm1694_vm6, %v4520_v3  ;;  %v3778_v4 = vld [vmem:[%s5334_s3 + $0x4] sm:$0xf]  ;;  %v4859_v7 = vld [vmem:[#allocation2] sm:$0xf] }
  0x6f   : > { %v1495_v33 = vrot.slane %v1493_v17, 5  ;;  %v3761_v35 = vcombine.low %v1468_v21, %v1482_v22  ;;  %v2039_v5 = vsel %vm2037_vm7, %v3778_v4, 0  ;;  %4363 = vmatprep.subr.msk.bf16.mxu1 %vm2037_vm7, %v3778_v4  ;;  %v1836_v49 = vld [vmem:[#allocation2 + $0xc] sm:$0x1] }
  0x70   : > { %4200 = vmatpush3.bf16.msra.mxu1 %v2039_v5 }
  0x71   : > { %v1496_v50 = vsel %vm4656_vm4, %v1491_v36, %v1495_v33  ;;  %4364 = vmatprep.subr.msk.bf16.mxu1 %vm2037_vm7, %v4855_v6  ;;  %v1845_v33 = vld [vmem:[#allocation2 + $0x18] sm:$0xf] }
  0x74   : > { %4066 = vmatmul.mubr.msk.bf16.gmra.mrb[4].mxu0 %vm318_vm1, %v3705_v25  ;;  %v1540_v25 = vshrl.u32 %v3756_v11, 16 }
  0x75   : > { %4071 = vmatprep.mubr.msk.bf16.mxu0 %vm318_vm1, %v4432_v26  ;;  %v1543_v26 = vshll.u32 %v3756_v11, 16 }
  0x76   : > { %v1542_v41 = vrot.slane %v1540_v25, 4 }
  0x77   : > { %v1545_v42 = vrot.slane %v1543_v26, 5 }
  0x79   : > { %v1546_v53 = vor.u32 %v1545_v42, %v1542_v41  ;;  %v1830_v42 = vld [vmem:[#allocation2 + $0x8] sm:$0xf] }
  0x7b   : > { %v1547_v61 = vrot.slane %v1546_v53, 4 }
  0x7c   : > { %4072 = vmatmul.mubr.msk.bf16.vlgmr.msra.gmra.mrb[0].mxu0 %vm318_vm1, %v4433_v27  ;;  %v1554_v27 = vshrl.u32 %v3758_v16, 16 }
  0x7d   : > { %4080 = vmatpush3.bf16.msra.mxu0 %v1364_v31  ;;  %4075 = vmatprep.mubr.msk.bf16.mxu0 %vm318_vm1, %v4434_v29  ;;  %v1518_v29 = vor.u32 %v1517_v13, %v1514_v12  ;;  %v1532_v31 = vor.u32 %v1531_v15, %v1528_v14  ;;  %v1552_v0 = vsel %vm4656_vm4, %v1547_v61, %v1551_v59 }
  0x7e   : > { %4361 = vmatprep.subr.msk.bf16.mxu0 %vm331_vm0, %v3760_v32  ;;  %v1535_v32 = vshll.u32 %v3755_v20, 16  ;;  %v1556_v43 = vrot.slane %v1554_v27, 4  ;;  %v4876_v27 = vld [vmem:[#allocation2 + $0x4] sm:$0x1] }
  0x7f   : > { %v1519_v45 = vrot.slane %v1518_v29, 4  ;;  %v1533_v47 = vrot.slane %v1532_v31, 4  ;;  %v1908_v31 = vshll.u32 %v4876_v27, 16 }
  0x80   : > { %v1537_v48 = vrot.slane %v1535_v32, 5  ;;  %v1560_v54 = vor.u32 %v1559_v44, %v1556_v43 }
  0x82   : > { %v1538_v57 = vsel %vm4656_vm4, %v1533_v47, %v1537_v48  ;;  %v1561_v62 = vrot.slane %v1560_v54, 4 }
  0x84   : > { %4076 = vmatmul.mubr.msk.bf16.gmra.mrb[4].mxu0 %vm318_vm1, %v4435_v37  ;;  %v1505_v37 = vrot.slane %v1504_v24, 4  ;;  %v1566_v1 = vsel %vm4656_vm4, %v1561_v62, %v1565_v63  ;;  %v1854_v62 = vld [vmem:[#allocation2 + $0x24] sm:$0x1] }
  0x85   : > { %4081 = vmatprep.mubr.msk.bf16.mxu0 %vm318_vm1, %v4436_v46  ;;  %v1523_v46 = vrot.slane %v1521_v30, 5  ;;  %v3764_v2 = vcombine.low %v1552_v0, %v1566_v1 }
  0x86   : > { %v1510_v52 = vsel %vm4656_vm4, %v1505_v37, %v1509_v38 }
  0x87   : > { %v1524_v56 = vsel %vm4656_vm4, %v1519_v45, %v1523_v46 }
  0x88   : > { %v3763_v60 = vcombine.low %v1524_v56, %v1538_v57  ;;  %v1851_v57 = vld [vmem:[#allocation2 + $0x20] sm:$0xf] }
  0x8c   : > { %4082 = vmatmul.mubr.msk.bf16.vlgmr.msra.gmra.mrb[0].mxu0 %vm318_vm1, %v4437_v58  ;;  %v3762_v58 = vcombine.low %v1496_v50, %v1510_v52 }
  0x8d   : > { %4090 = vmatpush3.bf16.msra.mxu0 %v1594_v9  ;;  %4085 = vmatprep.mubr.msk.bf16.mxu0 %vm318_vm1, %v4438_v10  ;;  %v1899_v9 = vshrl.u32 %v4859_v7, 16  ;;  %v1902_v10 = vshll.u32 %v4859_v7, 16 }
  0x8e   : > { %4362 = vmatprep.subr.msk.bf16.mxu0 %vm2037_vm7, %v3778_v4 }
  0x8f   : > { %v4871_v19 = vrot.slane %v1899_v9, 4  ;;  %v4873_v20 = vrot.slane %v1902_v10, 5  ;;  %v1842_v9 = vld [vmem:[#allocation2 + $0x14] sm:$0x1] }
  0x91   : > { %v1905_v30 = vor.u32 %v4873_v20, %v4871_v19 }
  0x94   : > { %4086 = vmatmul.mubr.msk.bf16.gmra.mrb[4].mxu0 %vm318_vm1, %v4439_v34  ;;  %v1848_v34 = vld [vmem:[#allocation2 + $0x1c] sm:$0x1] }
  0x95   : > { %4091 = vmatprep.mubr.msk.bf16.mxu0 %vm318_vm1, %v3761_v35 }
  0x9c   : > { %4092 = vmatmul.mubr.msk.bf16.vlgmr.msra.gmra.mrb[0].mxu0 %vm318_vm1, %v3762_v58 }
  0x9d   : > { %4095 = vmatprep.mubr.msk.bf16.mxu0 %vm318_vm1, %v3763_v60  ;;  %4100 = vmatpush3.bf16.msra.mxu0 %v2039_v5  ;;  %v1839_v5 = vld [vmem:[#allocation2 + $0x10] sm:$0xf] }
  0xa4   : > { %4096 = vmatmul.mubr.msk.bf16.gmra.mrb[4].mxu0 %vm318_vm1, %v3764_v2 }
 0x16f   : > { %v4093_v11 = vpop.f32.mrb[0].mxu0 }
 0x170   : > { %v1678_v12 = vadd.f32 %v4093_v11, %v4864_v8  ;;  %v1630_v13 = vpop.f32.mrb[1].mxu0 }
 0x171   : > { %v1676_v14 = vadd.f32 %v4864_v8, %v1630_v13  ;;  %v4094_v15 = vpop.f32.mrb[2].mxu0 }
 0x172   : > { %v1686_v16 = vmax.f32 %v1678_v12, 0.0  ;;  %v1679_v17 = vadd.f32 %v4094_v15, %v4864_v8  ;;  %v1633_v18 = vpop.f32.mrb[3].mxu0 }
 0x173   : > { %v1684_v21 = vmax.f32 %v1676_v14, 0.0  ;;  %v1677_v22 = vadd.f32 %v4864_v8, %v1633_v18 }
 0x174   : > { %v3907_v23 = vpack.c.bf16 %v1686_v16, %v1686_v16  ;;  %v1687_v24 = vmax.f32 %v1679_v17, 0.0 }
 0x175   : > { %v3905_v25 = vpack.c.bf16 %v1684_v21, %v1684_v21  ;;  %v1685_v26 = vmax.f32 %v1677_v22, 0.0 }
 0x176   : > { %v1763_v28 = vshrl.u32 %v3907_v23, 16  ;;  %v3908_v29 = vpack.c.bf16 %v1687_v24, %v1687_v24  ;;  %v1766_v32 = vshll.u32 %v3907_v23, 16 }
 0x177   : > { %v1747_v35 = vshrl.u32 %v3905_v25, 16  ;;  %v1750_v36 = vshll.u32 %v3905_v25, 16  ;;  %v3906_v37 = vpack.c.bf16 %v1685_v26, %v1685_v26  ;;  %v4097_v38 = vpop.f32.mrb[4].mxu0  ;;  %v1869_v26 = vld [vmem:[#allocation2 + $0x38] sm:$0xf] }
 0x178   : > { %v1765_v39 = vrot.slane %v1763_v28, 7  ;;  %v1771_v43 = vshrl.u32 %v3908_v29, 16  ;;  %v1774_v44 = vshll.u32 %v3908_v29, 16  ;;  %v1682_v45 = vadd.f32 %v4097_v38, %v4864_v8  ;;  %v1646_v46 = vpop.f32.mrb[5].mxu0  ;;  %v1860_v38 = vld [vmem:[#allocation2 + $0x2c] sm:$0x1] }
 0x179   : > { %v1749_v48 = vrot.slane %v1747_v35, 7  ;;  %v1755_v50 = vshrl.u32 %v3906_v37, 16  ;;  %v1758_v51 = vshll.u32 %v3906_v37, 16  ;;  %v1680_v52 = vadd.f32 %v4864_v8, %v1646_v46  ;;  %v4098_v53 = vpop.f32.mrb[6].mxu0  ;;  %v1857_v37 = vld [vmem:[#allocation2 + $0x28] sm:$0xf] }
 0x17a   : > { %v1768_v54 = vor.u32 %v1766_v32, %v1765_v39  ;;  %v1769_v55 = vrot.slane %v1765_v39, 4  ;;  %v1773_v56 = vrot.slane %v1771_v43, 7  ;;  %v1690_v58 = vmax.f32 %v1682_v45, 0.0  ;;  %v1649_v59 = vpop.f32.mrb[7].mxu0 }
 0x17b   : > { %v1752_v60 = vor.u32 %v1750_v36, %v1749_v48  ;;  %v1753_v61 = vrot.slane %v1749_v48, 4  ;;  %v1757_v63 = vrot.slane %v1755_v50, 7  ;;  %v1688_v0 = vmax.f32 %v1680_v52, 0.0 }
 0x17c   : > { %v1846_v1 = vsel %vm4883_vm10, %v1768_v54, %v1845_v33  ;;  %v1849_v2 = vsel %vm4890_vm11, %v1769_v55, %v1848_v34  ;;  %v1776_v3 = vor.u32 %v1774_v44, %v1773_v56  ;;  %v1777_v4 = vrot.slane %v1773_v56, 4  ;;  %v1872_v34 = vld [vmem:[#allocation2 + $0x3c] sm:$0x1]  ;;  %v1875_v55 = vld [vmem:[#allocation2 + $0x40] sm:$0xf] }
 0x17d   : > { %1847 = vst [vmem:[#allocation2 + $0x18] sm:$0xf] %v1846_v1  ;;  %1850 = vst [vmem:[#allocation2 + $0x1c] sm:$0x1] %v1849_v2  ;;  %v1831_v10 = vsel %vm4883_vm10, %v1752_v60, %v1830_v42  ;;  %v1837_v11 = vsel %vm4890_vm11, %v1753_v61, %v1836_v49  ;;  %v1760_v12 = vor.u32 %v1758_v51, %v1757_v63  ;;  %v1761_v13 = vrot.slane %v1757_v63, 4 }
 0x17e   : > { %1832 = vst [vmem:[#allocation2 + $0x8] sm:$0xf] %v1831_v10  ;;  %1838 = vst [vmem:[#allocation2 + $0xc] sm:$0x1] %v1837_v11  ;;  %v1852_v14 = vsel %vm4883_vm10, %v1776_v3, %v1851_v57  ;;  %v1855_v15 = vsel %vm4890_vm11, %v1777_v4, %v1854_v62  ;;  %v3911_v16 = vpack.c.bf16 %v1690_v58, %v1690_v58  ;;  %v4920_v43 = vrot.slane %v1908_v31, 5 }
 0x17f   : > { %v3909_v17 = vpack.c.bf16 %v1688_v0, %v1688_v0  ;;  %1853 = vst [vmem:[#allocation2 + $0x20] sm:$0xf] %v1852_v14  ;;  %1856 = vst [vmem:[#allocation2 + $0x24] sm:$0x1] %v1855_v15  ;;  %v1840_v18 = vsel %vm4883_vm10, %v1760_v12, %v1839_v5  ;;  %v1843_v21 = vsel %vm4890_vm11, %v1761_v13, %v1842_v9  ;;  %v1878_v56 = vld [vmem:[#allocation2 + $0x44] sm:$0x1] }
 0x180   : > { %v1683_v22 = vadd.f32 %v4098_v53, %v4864_v8  ;;  %v1681_v23 = vadd.f32 %v4864_v8, %v1649_v59  ;;  %1841 = vst [vmem:[#allocation2 + $0x10] sm:$0xf] %v1840_v18  ;;  %1844 = vst [vmem:[#allocation2 + $0x14] sm:$0x1] %v1843_v21  ;;  %v1795_v24 = vshrl.u32 %v3911_v16, 16  ;;  %v1798_v33 = vshll.u32 %v3911_v16, 16 }
 0x181   : > { %v1779_v25 = vshrl.u32 %v3909_v17, 16  ;;  %v1782_v36 = vshll.u32 %v3909_v17, 16  ;;  %v4916_v8 = vrot.slane %v1905_v30, 4  ;;  %v1863_v57 = vld [vmem:[#allocation2 + $0x30] sm:$0xf] }
 0x182   : > { %v1691_v28 = vmax.f32 %v1683_v22, 0.0  ;;  %v1689_v29 = vmax.f32 %v1681_v23, 0.0  ;;  %v1797_v32 = vrot.slane %v1795_v24, 7  ;;  %v1866_v0 = vld [vmem:[#allocation2 + $0x34] sm:$0x1] }
 0x183   : > { %v1781_v35 = vrot.slane %v1779_v25, 7  ;;  %v1911_v24 = vsel %vm4656_vm4, %v4916_v8, %v4920_v43 }
 0x184   : > { %v3912_v39 = vpack.c.bf16 %v1691_v28, %v1691_v28  ;;  %v3910_v42 = vpack.c.bf16 %v1689_v29, %v1689_v29  ;;  %v1800_v44 = vor.u32 %v1798_v33, %v1797_v32  ;;  %v1801_v45 = vrot.slane %v1797_v32, 4  ;;  %v4922_v49 = vld [vmem:[#allocation2 + $0x18] sm:$0xf]  ;;  %v4956_v23 = vld [vmem:[#allocation2 + $0x1c] sm:$0x1] }
 0x185   : > { %v1784_v46 = vor.u32 %v1782_v36, %v1781_v35  ;;  %v1785_v48 = vrot.slane %v1781_v35, 4  ;;  %v4924_v54 = vld [vmem:[#allocation2 + $0x8] sm:$0xf]  ;;  %v4934_v58 = vld [vmem:[#allocation2 + $0xc] sm:$0x1]  ;;  %v1941_v3 = vshrl.u32 %v4922_v49, 16 }
 0x186   : > { %v1803_v50 = vshrl.u32 %v3912_v39, 16  ;;  %v1806_v51 = vshll.u32 %v3912_v39, 16  ;;  %v1787_v52 = vshrl.u32 %v3910_v42, 16  ;;  %v1790_v53 = vshll.u32 %v3910_v42, 16  ;;  %v4946_v16 = vld [vmem:[#allocation2 + $0x20] sm:$0xf] }
 0x187   : > { %v1870_v19 = vsel %vm4883_vm10, %v1800_v44, %v1869_v26  ;;  %v1873_v20 = vsel %vm4890_vm11, %v1801_v45, %v1872_v34  ;;  %v1858_v30 = vsel %vm4883_vm10, %v1784_v46, %v1857_v37  ;;  %v1861_v31 = vsel %vm4890_vm11, %v1785_v48, %v1860_v38  ;;  %v4938_v63 = vld [vmem:[#allocation2 + $0x10] sm:$0xf]  ;;  %v4943_v11 = vld [vmem:[#allocation2 + $0x14] sm:$0x1]  ;;  %v4963_v41 = vld [vmem:[#allocation2 + $0x24] sm:$0x1] }
 0x188   : > { %1871 = vst [vmem:[#allocation2 + $0x38] sm:$0xf] %v1870_v19  ;;  %1874 = vst [vmem:[#allocation2 + $0x3c] sm:$0x1] %v1873_v20  ;;  %v1805_v59 = vrot.slane %v1803_v50, 7  ;;  %v1789_v60 = vrot.slane %v1787_v52, 7 }
 0x189   : > { %1859 = vst [vmem:[#allocation2 + $0x28] sm:$0xf] %v1858_v30  ;;  %1862 = vst [vmem:[#allocation2 + $0x2c] sm:$0x1] %v1861_v31  ;;  %v1913_v61 = vshrl.u32 %v4924_v54, 16  ;;  %v1916_v62 = vshll.u32 %v4924_v54, 16 }
 0x18a   : > { %v1927_v1 = vshrl.u32 %v4938_v63, 16  ;;  %v1930_v2 = vshll.u32 %v4938_v63, 16  ;;  %v1808_v4 = vor.u32 %v1806_v51, %v1805_v59  ;;  %v1809_v5 = vrot.slane %v1805_v59, 4 }
 0x18b   : > { %v1792_v9 = vor.u32 %v1790_v53, %v1789_v60  ;;  %v1793_v10 = vrot.slane %v1789_v60, 4  ;;  %v1915_v12 = vrot.slane %v1913_v61, 4  ;;  %v1918_v13 = vrot.slane %v1916_v62, 5 }
 0x18c   : > { %v1922_v14 = vshll.u32 %v4934_v58, 16  ;;  %v1929_v15 = vrot.slane %v1927_v1, 4  ;;  %v1876_v17 = vsel %vm4883_vm10, %v1808_v4, %v1875_v55  ;;  %v1879_v18 = vsel %vm4890_vm11, %v1809_v5, %v1878_v56 }
 0x18d   : > { %v1864_v21 = vsel %vm4883_vm10, %v1792_v9, %v1863_v57  ;;  %v1867_v22 = vsel %vm4890_vm11, %v1793_v10, %v1866_v0  ;;  %1877 = vst [vmem:[#allocation2 + $0x40] sm:$0xf] %v1876_v17  ;;  %1880 = vst [vmem:[#allocation2 + $0x44] sm:$0x1] %v1879_v18  ;;  %v1919_v25 = vor.u32 %v1918_v13, %v1915_v12  ;;  %v1932_v26 = vrot.slane %v1930_v2, 5 }
 0x18e   : > { %1865 = vst [vmem:[#allocation2 + $0x30] sm:$0xf] %v1864_v21  ;;  %1868 = vst [vmem:[#allocation2 + $0x34] sm:$0x1] %v1867_v22  ;;  %v1936_v28 = vshll.u32 %v4943_v11, 16  ;;  %v1943_v29 = vrot.slane %v1941_v3, 4 }
 0x18f   : > { %v1944_v47 = vshll.u32 %v4922_v49, 16  ;;  %v1955_v32 = vshrl.u32 %v4946_v16, 16  ;;  %v1958_v33 = vshll.u32 %v4946_v16, 16  ;;  %v1920_v34 = vrot.slane %v1919_v25, 4  ;;  %v4978_v31 = vld [vmem:[#allocation2 + $0x38] sm:$0xf] }
 0x190   : > { %v1924_v35 = vrot.slane %v1922_v14, 5  ;;  %v1933_v36 = vor.u32 %v1932_v26, %v1929_v15  ;;  %v1950_v37 = vshll.u32 %v4956_v23, 16  ;;  %v4969_v38 = vld [vmem:[#allocation2 + $0x28] sm:$0xf]  ;;  %v1938_v39 = vrot.slane %v1936_v28, 5 }
 0x191   : > { %v1946_v42 = vrot.slane %v1944_v47, 5  ;;  %v1957_v8 = vrot.slane %v1955_v32, 4  ;;  %v1960_v43 = vrot.slane %v1958_v33, 5  ;;  %v4973_v46 = vld [vmem:[#allocation2 + $0x2c] sm:$0x1]  ;;  %v1964_v48 = vshll.u32 %v4963_v41, 16 }
 0x192   : > { %v1925_v44 = vsel %vm4656_vm4, %v1920_v34, %v1924_v35  ;;  %v1934_v45 = vrot.slane %v1933_v36, 4  ;;  %v1969_v50 = vshrl.u32 %v4969_v38, 16  ;;  %v1972_v19 = vshll.u32 %v4969_v38, 16  ;;  %v4992_v5 = vld [vmem:[#allocation2 + $0x3c] sm:$0x1] }
 0x193   : > { %v3779_v51 = vcombine.low %v1911_v24, %v1925_v44  ;;  %v1947_v52 = vor.u32 %v1946_v42, %v1943_v29  ;;  %v1961_v53 = vor.u32 %v1960_v43, %v1957_v8  ;;  %v1952_v20 = vrot.slane %v1950_v37, 5  ;;  %v3803_v43 = vld [vmem:[%s5334_s3 + $0x8] sm:$0xf]  ;;  %v2206_v44 = vld [vmem:[#allocation2] sm:$0xe] }
 0x194   : > { %v1971_v30 = vrot.slane %v1969_v50, 4  ;;  %v1939_v55 = vsel %vm4656_vm4, %v1934_v45, %v1938_v39  ;;  %v1974_v57 = vrot.slane %v1972_v19, 5  ;;  %v1978_v59 = vshll.u32 %v4973_v46, 16  ;;  %v2207_v45 = vld [vmem:[#allocation2 + $0x8] sm:$0xe] }
 0x195   : > { %4101 = vmatprep.mubr.msk.bf16.mxu0 %vm2024_vm12, %v3779_v51  ;;  %v1948_v56 = vrot.slane %v1947_v52, 4  ;;  %v4984_v60 = vld [vmem:[#allocation2 + $0x30] sm:$0xf]  ;;  %v4986_v61 = vld [vmem:[#allocation2 + $0x34] sm:$0x1]  ;;  %v1962_v2 = vrot.slane %v1961_v53, 4  ;;  %v3787_v8 = vcombine.low %v4859_v7, %v4924_v54  ;;  %v3789_v7 = vcombine.low %v4946_v16, %v4969_v38 }
 0x196   : > { %v1983_v62 = vshrl.u32 %v4984_v60, 16  ;;  %v1986_v0 = vshll.u32 %v4984_v60, 16  ;;  %v1966_v3 = vrot.slane %v1964_v48, 5  ;;  %v1975_v4 = vor.u32 %v1974_v57, %v1971_v30  ;;  %v3812_v54 = vld [vmem:[%s5334_s3 + $0xc] sm:$0xf] }
 0x197   : > { %v1953_v1 = vsel %vm4656_vm4, %v1948_v56, %v1952_v20  ;;  %v1997_v13 = vshrl.u32 %v4978_v31, 16  ;;  %v1980_v15 = vrot.slane %v1978_v59, 5  ;;  %v1992_v17 = vshll.u32 %v4986_v61, 16  ;;  %v2208_v38 = vld [vmem:[#allocation2 + $0x10] sm:$0xe] }
 0x198   : > { %v3780_v9 = vcombine.low %v1939_v55, %v1953_v1  ;;  %v1985_v10 = vrot.slane %v1983_v62, 4  ;;  %v1988_v12 = vrot.slane %v1986_v0, 5  ;;  %v1976_v14 = vrot.slane %v1975_v4, 4  ;;  %v2209_v19 = vld [vmem:[#allocation2 + $0x18] sm:$0xe] }
 0x199   : > { %v2000_v18 = vshll.u32 %v4978_v31, 16  ;;  %v1999_v22 = vrot.slane %v1997_v13, 4  ;;  %v1967_v24 = vsel %vm4656_vm4, %v1962_v2, %v1966_v3  ;;  %v2006_v28 = vshll.u32 %v4992_v5, 16  ;;  %v2210_v56 = vld [vmem:[#allocation2 + $0x20] sm:$0xe] }
 0x19a   : > { %4102 = vmatmul.mubr.msk.bf16.vlgmr.msra.gmra.mrb[8].mxu0 %vm2024_vm12, %v3780_v9  ;;  %v1989_v21 = vor.u32 %v1988_v12, %v1985_v10  ;;  %v1981_v25 = vsel %vm4656_vm4, %v1976_v14, %v1980_v15  ;;  %v1994_v32 = vrot.slane %v1992_v17, 5  ;;  %v2139_v42 = vsel %vm2037_vm7, %v4855_v6, 0  ;;  %v3821_v13 = vld [vmem:[%s5334_s3 + $0x10] sm:$0xf] }
 0x19b   : > { %v2002_v26 = vrot.slane %v2000_v18, 5  ;;  %v3781_v29 = vcombine.low %v1967_v24, %v1981_v25  ;;  %v2008_v36 = vrot.slane %v2006_v28, 5  ;;  %v3788_v48 = vcombine.low %v4938_v63, %v4922_v49  ;;  %v2487_v17 = vld [vmem:[#allocation2 + $0x10] sm:$0xf] }
 0x19c   : > { %v1990_v47 = vrot.slane %v1989_v21, 4  ;;  %v2292_v6 = vsel %vm2037_vm7, %v3803_v43, 0  ;;  %v3795_v50 = vrot.slane %v2206_v44, 9  ;;  %v2235_v51 = vrot.slane %v4876_v27, 5  ;;  %v2211_v27 = vld [vmem:[#allocation2 + $0x28] sm:$0xe] }
 0x19d   : > { %v2003_v33 = vor.u32 %v2002_v26, %v1999_v22  ;;  %4105 = vmatprep.mubr.msk.bf16.mxu1 %vm2024_vm12, %v3781_v29  ;;  %v3796_v52 = vrot.slane %v2207_v45, 9  ;;  %v2239_v53 = vrot.slane %v4934_v58, 5  ;;  %v3790_v58 = vcombine.low %v4984_v60, %v4978_v31  ;;  %v2212_v60 = vld [vmem:[#allocation2 + $0x30] sm:$0xe]  ;;  %v2485_v21 = vld [vmem:[#allocation2 + $0x8] sm:$0xf] }
 0x19e   : > { %v1995_v34 = vsel %vm4656_vm4, %v1990_v47, %v1994_v32  ;;  %v2236_v63 = vsel %vm5030_vm15, %v3795_v50, %v2235_v51  ;;  %v3797_v30 = vrot.slane %v2208_v38, 9  ;;  %v2243_v55 = vrot.slane %v4943_v11, 5  ;;  %v4444_v29 = vld [vmem:[#allocation2 + $0x8] ss:$8 sps:$4 sm:$0xff]   ;;  %v2491_v32 = vld [vmem:[#allocation2 + $0x20] sm:$0xf] }
 0x19f   : > { %v2004_v35 = vrot.slane %v2003_v33, 4  ;;  %v2240_v16 = vsel %vm5030_vm15, %v3796_v52, %v2239_v53  ;;  %v2255_v57 = vrot.slane %v4973_v46, 5  ;;  %v3800_v59 = vrot.slane %v2211_v27, 9  ;;  %v2495_v33 = vld [vmem:[#allocation2 + $0x30] sm:$0xf] }
 0x1a0   : > { %v3804_v20 = vcombine.low %v2236_v63, %v2240_v16  ;;  %v3798_v62 = vrot.slane %v2209_v19, 9  ;;  %v2247_v0 = vrot.slane %v4956_v23, 5  ;;  %v2251_v1 = vrot.slane %v4963_v41, 5  ;;  %v2213_v23 = vld [vmem:[#allocation2 + $0x38] sm:$0xe] }
 0x1a1   : > { %v2009_v37 = vsel %vm4656_vm4, %v2004_v35, %v2008_v36  ;;  %v3799_v2 = vrot.slane %v2210_v56, 9  ;;  %v2244_v31 = vsel %vm5030_vm15, %v3797_v30, %v2243_v55  ;;  %v2256_v11 = vsel %vm5030_vm15, %v3800_v59, %v2255_v57  ;;  %v2489_v36 = vld [vmem:[#allocation2 + $0x18] sm:$0xf]  ;;  %v4446_v16 = vld [vmem:[#allocation2 + $0x28] ss:$8 sps:$4 sm:$0xff]  }
 0x1a2   : > { %v3782_v39 = vcombine.low %v1995_v34, %v2009_v37  ;;  %v2248_v46 = vsel %vm5030_vm15, %v3798_v62, %v2247_v0  ;;  %v2410_v4 = vsel %vm2037_vm7, %v3812_v54, 0  ;;  %v3801_v41 = vrot.slane %v2212_v60, 9  ;;  %v5070_v37 = vld [vmem:[#allocation2 + $0x14] sm:$0x1]  ;;  %v4445_v50 = vld [vmem:[#allocation2 + $0x18] ss:$8 sps:$4 sm:$0xff]  }
 0x1a3   : > { %v3805_v3 = vcombine.low %v2244_v31, %v2248_v46  ;;  %v2252_v9 = vsel %vm5030_vm15, %v3799_v2, %v2251_v1  ;;  %v2259_v12 = vrot.slane %v4986_v61, 5  ;;  %v3802_v14 = vrot.slane %v2213_v23, 9  ;;  %v5079_v38 = vld [vmem:[%s5334_s3 + $0x14] sm:$0xf]  ;;  %v2499_v56 = vld [vmem:[#allocation2 + $0x40] sm:$0xf] }
 0x1a4   : > { %4106 = vmatmul.mubr.msk.bf16.vlgmr.msra.gmra.mrb[0].mxu1 %vm2024_vm12, %v3782_v39  ;;  %v3806_v10 = vcombine.low %v2252_v9, %v2256_v11  ;;  %v2263_v15 = vrot.slane %v4992_v5, 5  ;;  %v2516_v61 = vshrl.u32 %v2487_v17, 16  ;;  %v2519_v22 = vshll.u32 %v2487_v17, 16  ;;  %v5084_v57 = vld [vmem:[#allocation2 + $0x24] sm:$0x1] }
 0x1a5   : > { %4110 = vmatpush3.bf16.msra.mxu1 %v2139_v42  ;;  %4111 = vmatprep.mubr.msk.bf16.mxu1 %vm2024_vm12, %v3787_v8  ;;  %v2260_v18 = vsel %vm5030_vm15, %v3801_v41, %v2259_v12  ;;  %v2502_v26 = vshrl.u32 %v2485_v21, 16  ;;  %v2505_v28 = vshll.u32 %v2485_v21, 16  ;;  %v2544_v39 = vshrl.u32 %v2491_v32, 16  ;;  %v2493_v8 = vld [vmem:[#allocation2 + $0x28] sm:$0xf] }
 0x1a6   : > { %4365 = vmatprep.subr.msk.bf16.mxu1 %vm2037_vm7, %v3803_v43  ;;  %v2264_v24 = vsel %vm5030_vm15, %v3802_v14, %v2263_v15  ;;  %v2518_v47 = vrot.slane %v2516_v61, 4  ;;  %v2521_v5 = vrot.slane %v2519_v22, 5  ;;  %v2547_v42 = vshll.u32 %v2491_v32, 16  ;;  %v2497_v11 = vld [vmem:[#allocation2 + $0x38] sm:$0xf] }
 0x1a7   : > { %v3807_v25 = vcombine.low %v2260_v18, %v2264_v24  ;;  %v2504_v34 = vrot.slane %v2502_v26, 4  ;;  %v2507_v35 = vrot.slane %v2505_v28, 5  ;;  %v2572_v44 = vshrl.u32 %v2495_v33, 16  ;;  %v5088_v60 = vld [vmem:[#allocation2 + $0x1c] sm:$0x1] }
 0x1a8   : > { %v2522_v43 = vor.u32 %v2521_v5, %v2518_v47  ;;  %v2575_v45 = vshll.u32 %v2495_v33, 16  ;;  %v2525_v52 = vshll.u32 %v5070_v37, 16  ;;  %v2558_v53 = vshrl.u32 %v2493_v8, 16  ;;  %v5095_v14 = vld [vmem:[#allocation2 + $0x2c] sm:$0x1] }
 0x1a9   : > { %v2508_v51 = vor.u32 %v2507_v35, %v2504_v34  ;;  %v2561_v63 = vshll.u32 %v2493_v8, 16  ;;  %v2546_v27 = vrot.slane %v2544_v39, 4  ;;  %v2574_v30 = vrot.slane %v2572_v44, 4  ;;  %v4447_v18 = vld [vmem:[#allocation2 + $0x38] ss:$8 sps:$4 sm:$0xff]  }
 0x1aa   : > { %v2577_v55 = vrot.slane %v2575_v45, 5  ;;  %v2527_v1 = vrot.slane %v2525_v52, 5  ;;  %v2560_v2 = vrot.slane %v2558_v53, 4  ;;  %v2603_v9 = vshll.u32 %v2499_v56, 16  ;;  %v2716_v52 = vld [vmem:[#allocation2 + $0x10] sm:$0xe] }
 0x1ab   : > { %v2509_v0 = vrot.slane %v2508_v51, 4  ;;  %v2563_v31 = vrot.slane %v2561_v63, 5  ;;  %v2586_v15 = vshrl.u32 %v2497_v11, 16  ;;  %v2589_v17 = vshll.u32 %v2497_v11, 16  ;;  %v2718_v11 = vld [vmem:[#allocation2 + $0x20] sm:$0xe] }
 0x1ac   : > { %4112 = vmatmul.mubr.msk.bf16.vlgmr.msra.gmra.mrb[4].mxu1 %vm2024_vm12, %v3788_v48  ;;  %v2640_v48 = vsel %vm2037_vm7, %v3821_v13, 0  ;;  %v2578_v41 = vor.u32 %v2577_v55, %v2574_v30  ;;  %v2539_v61 = vshll.u32 %v5088_v60, 16  ;;  %v2567_v47 = vshll.u32 %v5095_v14, 16  ;;  %v3847_v30 = vld [vmem:[%s5334_s3 + $0x18] sm:$0xf] }
 0x1ad   : > { %4120 = vmatpush3.bf16.msra.mxu1 %v2292_v6  ;;  %4115 = vmatprep.mubr.msk.bf16.mxu1 %vm2024_vm12, %v3789_v7  ;;  %v5073_v6 = vld [vmem:[#allocation2 + $0xc] sm:$0x1]  ;;  %v2530_v7 = vshrl.u32 %v2489_v36, 16  ;;  %v2564_v22 = vor.u32 %v2563_v31, %v2560_v2  ;;  %v2588_v34 = vrot.slane %v2586_v15, 4  ;;  %v2591_v35 = vrot.slane %v2589_v17, 5 }
 0x1ae   : > { %4366 = vmatprep.subr.msk.bf16.mxu1 %vm2037_vm7, %v3812_v54  ;;  %v2533_v54 = vshll.u32 %v2489_v36, 16  ;;  %v2511_v19 = vshll.u32 %v5073_v6, 16  ;;  %v2579_v5 = vrot.slane %v2578_v41, 4  ;;  %v2541_v8 = vrot.slane %v2539_v61, 5 }
 0x1af   : > { %v2532_v59 = vrot.slane %v2530_v7, 4  ;;  %v2565_v36 = vrot.slane %v2564_v22, 4  ;;  %v2569_v45 = vrot.slane %v2567_v47, 5  ;;  %v5110_v7 = vld [vmem:[#allocation2 + $0x3c] sm:$0x1]  ;;  %v2798_v63 = vsel %vm2037_vm7, %v5079_v38, 0 }
 0x1b0   : > { %v2535_v62 = vrot.slane %v2533_v54, 5  ;;  %v2513_v23 = vrot.slane %v2511_v19, 5  ;;  %v3831_v55 = vrot.slane %v2716_v52, 9  ;;  %v2753_v41 = vrot.slane %v5084_v57, 5 }
 0x1b1   : > { %v2757_v61 = vrot.slane %v5095_v14, 5 }
 0x1b2   : > { %v2536_v12 = vor.u32 %v2535_v62, %v2532_v59  ;;  %v2514_v21 = vsel %vm4656_vm4, %v2509_v0, %v2513_v23  ;;  %v2741_v0 = vrot.slane %v5073_v6, 5  ;;  %v2717_v23 = vld [vmem:[#allocation2 + $0x18] sm:$0xe] }
 0x1b3   : > { %v3832_v17 = vrot.slane %v2717_v23, 9 }
 0x1b4   : > { %4116 = vmatmul.mubr.msk.bf16.gmra.mrb[0].mxu1 %vm2024_vm12, %v3790_v58  ;;  %v2549_v58 = vrot.slane %v2547_v42, 5  ;;  %v2537_v32 = vrot.slane %v2536_v12, 4  ;;  %v5104_v42 = vld [vmem:[#allocation2 + $0x44] sm:$0x1]  ;;  %v2719_v12 = vld [vmem:[#allocation2 + $0x28] sm:$0xe] }
 0x1b5   : > { %4121 = vmatprep.mubr.msk.bf16.mxu1 %vm2024_vm12, %v3804_v20  ;;  %v2523_v20 = vrot.slane %v2522_v43, 4  ;;  %v2609_v51 = vshll.u32 %v5104_v42, 16  ;;  %v2769_v14 = vrot.slane %v5104_v42, 5 }
 0x1b6   : > { %v2550_v46 = vor.u32 %v2549_v58, %v2546_v27  ;;  %v2542_v54 = vsel %vm4656_vm4, %v2537_v32, %v2541_v8  ;;  %v2595_v58 = vshll.u32 %v5110_v7, 16 }
 0x1b7   : > { %v2611_v59 = vrot.slane %v2609_v51, 5  ;;  %v3000_v51 = vld [vmem:[#allocation2 + $0x30] sm:$0xf] }
 0x1b8   : > { %v2551_v26 = vrot.slane %v2550_v46, 4  ;;  %v2720_v46 = vld [vmem:[#allocation2 + $0x30] sm:$0xe] }
 0x1bc   : > { %4122 = vmatmul.mubr.msk.bf16.vlgmr.msra.gmra.mrb[4].mxu1 %vm2024_vm12, %v3805_v3  ;;  %v5090_v3 = vld [vmem:[#allocation2 + $0x34] sm:$0x1] }
 0x1bd   : > { %4130 = vmatpush3.bf16.msra.mxu1 %v2410_v4  ;;  %4125 = vmatprep.mubr.msk.bf16.mxu1 %vm2024_vm12, %v3806_v10  ;;  %v2600_v4 = vshrl.u32 %v2499_v56, 16  ;;  %v2528_v10 = vsel %vm4656_vm4, %v2523_v20, %v2527_v1  ;;  %v2581_v24 = vshll.u32 %v5090_v3, 16  ;;  %v2715_v20 = vld [vmem:[#allocation2 + $0x8] sm:$0xe]  ;;  %v2745_v56 = vrot.slane %v5070_v37, 5 }
 0x1be   : > { %4367 = vmatprep.subr.msk.bf16.mxu1 %vm2037_vm7, %v3821_v13  ;;  %v2553_v13 = vshll.u32 %v5084_v57, 16  ;;  %v3830_v62 = vrot.slane %v2715_v20, 9  ;;  %v2597_v1 = vrot.slane %v2595_v58, 5  ;;  %v2761_v15 = vrot.slane %v5090_v3, 5 }
 0x1bf   : > { %v2602_v28 = vrot.slane %v2600_v4, 4  ;;  %v2583_v39 = vrot.slane %v2581_v24, 5  ;;  %v2746_v31 = vsel %vm5030_vm15, %v3831_v55, %v2745_v56  ;;  %v2722_v24 = vld [vmem:[#allocation2 + $0x40] sm:$0xe]  ;;  %v2917_v3 = vsel %vm2037_vm7, %v3847_v30, 0 }
 0x1c0   : > { %v2555_v33 = vrot.slane %v2553_v13, 5  ;;  %v3835_v13 = vrot.slane %v2720_v46, 9  ;;  %v3837_v47 = vrot.slane %v2722_v24, 9  ;;  %v3068_v55 = vshll.u32 %v3000_v51, 16  ;;  %v3006_v56 = vld [vmem:[#allocation2 + $0x48] sm:$0xf] }
 0x1c1   : > { %v4450_v46 = vld [vmem:[#allocation2 + $0x30] ss:$8 sps:$4 sm:$0xff]  }
 0x1c2   : > { %v2556_v43 = vsel %vm4656_vm4, %v2551_v26, %v2555_v33  ;;  %v2762_v57 = vsel %vm5030_vm15, %v3835_v13, %v2761_v15  ;;  %v2765_v33 = vrot.slane %v5110_v7, 5  ;;  %v3004_v13 = vld [vmem:[#allocation2 + $0x40] sm:$0xf] }
 0x1c3   : > { %v3823_v53 = vcombine.low %v2542_v54, %v2556_v43 }
 0x1c4   : > { %4126 = vmatmul.mubr.msk.bf16.gmra.mrb[0].mxu1 %vm2024_vm12, %v3807_v25  ;;  %v3822_v25 = vcombine.low %v2514_v21, %v2528_v10  ;;  %v3833_v10 = vrot.slane %v2718_v11, 9  ;;  %v3834_v21 = vrot.slane %v2719_v12, 9  ;;  %v3070_v12 = vrot.slane %v3068_v55, 5 }
 0x1c5   : > { %4131 = vmatprep.mubr.msk.bf16.mxu1 %vm2024_vm12, %v4444_v29  ;;  %v2605_v29 = vrot.slane %v2603_v9, 5  ;;  %v2742_v9 = vsel %vm5030_vm15, %v3830_v62, %v2741_v0 }
 0x1c6   : > { %v3839_v6 = vcombine.low %v2742_v9, %v2746_v31  ;;  %v2754_v22 = vsel %vm5030_vm15, %v3833_v10, %v2753_v41 }
 0x1c7   : > { %v2606_v44 = vor.u32 %v2605_v29, %v2602_v28  ;;  %v2758_v28 = vsel %vm5030_vm15, %v3834_v21, %v2757_v61  ;;  %v3110_v21 = vshll.u32 %v3006_v56, 16 }
 0x1c8   : > { %v3841_v29 = vcombine.low %v2758_v28, %v2762_v57  ;;  %v5181_v57 = vld [vmem:[#allocation2 + $0x2c] sm:$0x1]  ;;  %v5185_v28 = vld [vmem:[#allocation2 + $0x34] sm:$0x1] }
 0x1c9   : > { %v2607_v19 = vrot.slane %v2606_v44, 4  ;;  %v3264_v40 = vrot.slane %v5185_v28, 5 }
 0x1cb   : > { %v2612_v2 = vsel %vm4656_vm4, %v2607_v19, %v2611_v59  ;;  %v3002_v19 = vld [vmem:[#allocation2 + $0x38] sm:$0xf]  ;;  %v5168_v59 = vld [vmem:[#allocation2 + $0x1c] sm:$0x1] }
 0x1cc   : > { %4132 = vmatmul.mubr.msk.bf16.vlgmr.msra.gmra.mrb[4].mxu1 %vm2024_vm12, %v4445_v50  ;;  %v2592_v50 = vor.u32 %v2591_v35, %v2588_v34  ;;  %v2992_v34 = vld [vmem:[#allocation2 + $0x10] sm:$0xf]  ;;  %v2770_v35 = vsel %vm5030_vm15, %v3837_v47, %v2769_v14  ;;  %v3079_v11 = vshrl.u32 %v3002_v19, 16  ;;  %v3032_v10 = vshll.u32 %v5168_v59, 16 }
 0x1cd   : > { %4140 = vmatpush3.bf16.msra.mxu1 %v2640_v48  ;;  %4135 = vmatprep.mubr.msk.bf16.mxu1 %vm2024_vm12, %v4446_v16  ;;  %v2584_v48 = vsel %vm4656_vm4, %v2579_v5, %v2583_v39  ;;  %v2570_v16 = vsel %vm4656_vm4, %v2565_v36, %v2569_v45  ;;  %v3856_v5 = vld [vmem:[%s5334_s3 + $0x1c] sm:$0xf]  ;;  %v2994_v36 = vld [vmem:[#allocation2 + $0x18] sm:$0xf]  ;;  %v3009_v39 = vshrl.u32 %v2992_v34, 16  ;;  %v3012_v42 = vshll.u32 %v2992_v34, 16 }
 0x1ce   : > { %4368 = vmatprep.subr.msk.bf16.mxu1 %vm2037_vm7, %v5079_v38  ;;  %v3824_v27 = vcombine.low %v2570_v16, %v2584_v48  ;;  %v2593_v38 = vrot.slane %v2592_v50, 4  ;;  %v3023_v44 = vshrl.u32 %v2994_v36, 16  ;;  %v3026_v45 = vshll.u32 %v2994_v36, 16  ;;  %v4448_v48 = vld [vmem:[#allocation2 + $0x10] ss:$8 sps:$4 sm:$0xff]  }
 0x1cf   : > { %v3011_v54 = vrot.slane %v3009_v39, 4  ;;  %v3014_v7 = vrot.slane %v3012_v42, 5  ;;  %v2998_v50 = vld [vmem:[#allocation2 + $0x28] sm:$0xf]  ;;  %v5165_v16 = vld [vmem:[#allocation2 + $0x14] sm:$0x1] }
 0x1d0   : > { %v2598_v37 = vsel %vm4656_vm4, %v2593_v38, %v2597_v1  ;;  %v3025_v52 = vrot.slane %v3023_v44, 4  ;;  %v3054_v58 = vshll.u32 %v2998_v50, 16  ;;  %v3147_v38 = vsel %vm2037_vm7, %v3856_v5, 0  ;;  %v4449_v1 = vld [vmem:[#allocation2 + $0x20] ss:$8 sps:$4 sm:$0xff]  }
 0x1d1   : > { %v3825_v4 = vcombine.low %v2598_v37, %v2612_v2  ;;  %v3015_v20 = vor.u32 %v3014_v7, %v3011_v54  ;;  %v3018_v2 = vshll.u32 %v5165_v16, 16  ;;  %v3082_v37 = vshll.u32 %v3002_v19, 16  ;;  %v5190_v34 = vld [vmem:[#allocation2 + $0x3c] sm:$0x1]  ;;  %v4451_v39 = vld [vmem:[#allocation2 + $0x40] ss:$8 sps:$4 sm:$0xff]  }
 0x1d2   : > { %v3056_v23 = vrot.slane %v3054_v58, 5  ;;  %v3081_v24 = vrot.slane %v3079_v11, 4  ;;  %v3034_v14 = vrot.slane %v3032_v10, 5  ;;  %v3112_v36 = vrot.slane %v3110_v21, 5  ;;  %v5199_v58 = vld [vmem:[#allocation2 + $0x44] sm:$0x1] }
 0x1d3   : > { %v3020_v61 = vrot.slane %v3018_v2, 5  ;;  %v5201_v19 = vld [vmem:[#allocation2 + $0x4c] sm:$0x1]  ;;  %v3102_v2 = vshll.u32 %v5199_v58, 16 }
 0x1d4   : > { %4136 = vmatmul.mubr.msk.bf16.gmra.mrb[0].mxu1 %vm2024_vm12, %v4447_v18  ;;  %v2749_v18 = vrot.slane %v5088_v60, 5  ;;  %v2721_v60 = vld [vmem:[#allocation2 + $0x38] sm:$0xe] }
 0x1d5   : > { %4141 = vmatprep.mubr.msk.bf16.mxu1 %vm2024_vm12, %v3822_v25  ;;  %v3836_v32 = vrot.slane %v2721_v60, 9  ;;  %v3093_v60 = vshrl.u32 %v3004_v13, 16 }
 0x1d6   : > { %v2750_v25 = vsel %vm5030_vm15, %v3832_v17, %v2749_v18  ;;  %v3107_v18 = vshrl.u32 %v3006_v56, 16 }
 0x1d7   : > { %v3840_v26 = vcombine.low %v2750_v25, %v2754_v22  ;;  %v2766_v8 = vsel %vm5030_vm15, %v3836_v32, %v2765_v33  ;;  %v3084_v25 = vrot.slane %v3082_v37, 5  ;;  %v3060_v33 = vshll.u32 %v5181_v57, 16 }
 0x1d8   : > { %v3842_v43 = vcombine.low %v2766_v8, %v2770_v35  ;;  %v3109_v35 = vrot.slane %v3107_v18, 4  ;;  %v3095_v54 = vrot.slane %v3093_v60, 4  ;;  %v3252_v18 = vrot.slane %v5168_v59, 5  ;;  %v3224_v60 = vld [vmem:[#allocation2 + $0x20] sm:$0xe] }
 0x1d9   : > { %v3085_v44 = vor.u32 %v3084_v25, %v3081_v24  ;;  %v3225_v24 = vld [vmem:[#allocation2 + $0x28] sm:$0xe] }
 0x1da   : > { %v3868_v59 = vrot.slane %v3225_v24, 9 }
 0x1dc   : > { %4142 = vmatmul.mubr.msk.bf16.vlgmr.msra.gmra.mrb[4].mxu1 %vm2024_vm12, %v3823_v53  ;;  %v3028_v53 = vrot.slane %v3026_v45, 5 }
 0x1dd   : > { %4150 = vmatpush3.bf16.msra.mxu1 %v2798_v63  ;;  %4145 = vmatprep.mubr.msk.bf16.mxu1 %vm2024_vm12, %v3824_v27  ;;  %v2996_v63 = vld [vmem:[#allocation2 + $0x20] sm:$0xf]  ;;  %v3051_v27 = vshrl.u32 %v2998_v50, 16 }
 0x1de   : > { %4369 = vmatprep.subr.msk.bf16.mxu1 %vm2037_vm7, %v3847_v30  ;;  %v3065_v30 = vshrl.u32 %v3000_v51, 16  ;;  %v3037_v62 = vshrl.u32 %v2996_v63, 16  ;;  %v3040_v0 = vshll.u32 %v2996_v63, 16  ;;  %v3029_v31 = vor.u32 %v3028_v53, %v3025_v52 }
 0x1df   : > { %v3053_v9 = vrot.slane %v3051_v27, 4  ;;  %v3088_v51 = vshll.u32 %v5190_v34, 16  ;;  %v3062_v53 = vrot.slane %v3060_v33, 5  ;;  %v3086_v27 = vrot.slane %v3085_v44, 4 }
 0x1e0   : > { %v3067_v41 = vrot.slane %v3065_v30, 4  ;;  %v3039_v15 = vrot.slane %v3037_v62, 4  ;;  %v3042_v17 = vrot.slane %v3040_v0, 5  ;;  %v3030_v22 = vrot.slane %v3029_v31, 4  ;;  %v3222_v31 = vld [vmem:[#allocation2 + $0x10] sm:$0xe] }
 0x1e1   : > { %v3090_v0 = vrot.slane %v3088_v51, 5 }
 0x1e2   : > { %v3043_v32 = vor.u32 %v3042_v17, %v3039_v15  ;;  %v3035_v42 = vsel %vm4656_vm4, %v3030_v22, %v3034_v14  ;;  %v3248_v15 = vrot.slane %v5165_v16, 5  ;;  %v3226_v16 = vld [vmem:[#allocation2 + $0x30] sm:$0xe]  ;;  %v3227_v14 = vld [vmem:[#allocation2 + $0x38] sm:$0xe] }
 0x1e4   : > { %4146 = vmatmul.mubr.msk.bf16.gmra.mrb[0].mxu1 %vm2024_vm12, %v3825_v4  ;;  %v5174_v4 = vld [vmem:[%s5334_s3 + $0x20] sm:$0xf]  ;;  %v3044_v52 = vrot.slane %v3043_v32, 4  ;;  %v3867_v32 = vrot.slane %v3224_v60, 9 }
 0x1e5   : > { %4151 = vmatprep.mubr.msk.bf16.mxu1 %vm2024_vm12, %v3839_v6  ;;  %v3016_v6 = vrot.slane %v3015_v20, 4  ;;  %v3113_v20 = vor.u32 %v3112_v36, %v3109_v35  ;;  %v3305_v37 = vsel %vm2037_vm7, %v5174_v4, 0  ;;  %v3870_v35 = vrot.slane %v3227_v14, 9 }
 0x1e6   : > { %v3268_v36 = vrot.slane %v5190_v34, 5 }
 0x1e7   : > { %v3021_v47 = vsel %vm4656_vm4, %v3016_v6, %v3020_v61 }
 0x1e8   : > { %v3857_v45 = vcombine.low %v3021_v47, %v3035_v42  ;;  %v3260_v47 = vrot.slane %v5181_v57, 5  ;;  %v3229_v42 = vld [vmem:[#allocation2 + $0x48] sm:$0xe] }
 0x1e9   : > { %v3872_v34 = vrot.slane %v3229_v42, 9 }
 0x1ec   : > { %4152 = vmatmul.mubr.msk.bf16.vlgmr.msra.gmra.mrb[4].mxu1 %vm2024_vm12, %v3840_v26  ;;  %v5183_v26 = vld [vmem:[#allocation2 + $0x24] sm:$0x1] }
 0x1ed   : > { %4160 = vmatpush3.bf16.msra.mxu1 %v2917_v3  ;;  %4155 = vmatprep.mubr.msk.bf16.mxu1 %vm2024_vm12, %v3841_v29  ;;  %v3057_v3 = vor.u32 %v3056_v23, %v3053_v9  ;;  %v3096_v29 = vshll.u32 %v3004_v13, 16  ;;  %v3046_v8 = vshll.u32 %v5183_v26, 16  ;;  %v3114_v9 = vrot.slane %v3113_v20, 4 }
 0x1ee   : > { %4370 = vmatprep.subr.msk.bf16.mxu1 %vm2037_vm7, %v3856_v5  ;;  %v3071_v5 = vor.u32 %v3070_v12, %v3067_v41  ;;  %v3223_v41 = vld [vmem:[#allocation2 + $0x18] sm:$0xe]  ;;  %v3403_v12 = vld [vmem:[%s5336_s5] sm:$0x3]  ;;  %v3865_v13 = vrot.slane %v3222_v31, 9  ;;  %v3256_v33 = vrot.slane %v5183_v26, 5  ;;  %v3269_v26 = vsel %vm5030_vm15, %v3870_v35, %v3268_v36 }
 0x1ef   : > { %v3098_v7 = vrot.slane %v3096_v29, 5  ;;  %v3048_v30 = vrot.slane %v3046_v8, 5  ;;  %v3866_v17 = vrot.slane %v3223_v41, 9  ;;  %v3228_v8 = vld [vmem:[#allocation2 + $0x40] sm:$0xe]  ;;  %v3444_v44 = vsel %vm331_vm0, %v3403_v12, 0 }
 0x1f0   : > { %v3072_v50 = vrot.slane %v3071_v5, 4  ;;  %v3249_v22 = vsel %vm5030_vm15, %v3865_v13, %v3248_v15  ;;  %v3869_v5 = vrot.slane %v3226_v16, 9 }
 0x1f1   : > { %v3099_v56 = vor.u32 %v3098_v7, %v3095_v54  ;;  %v3272_v54 = vrot.slane %v5199_v58, 5  ;;  %v3276_v7 = vrot.slane %v5201_v19, 5  ;;  %v4455_v58 = vld [vmem:[%s4626_s21 + $0x108] ss:$8 sps:$4 sm:$0xff]  }
 0x1f2   : > { %v3265_v57 = vsel %vm5030_vm15, %v3869_v5, %v3264_v40 }
 0x1f3   : > { %v3100_v6 = vrot.slane %v3099_v56, 4  ;;  %v3277_v51 = vsel %vm5030_vm15, %v3872_v34, %v3276_v7 }
 0x1f4   : > { %4156 = vmatmul.mubr.msk.bf16.gmra.mrb[0].mxu1 %vm2024_vm12, %v3842_v43  ;;  %v3074_v43 = vshll.u32 %v5185_v28, 16  ;;  %v3257_v28 = vsel %vm5030_vm15, %v3867_v32, %v3256_v33 }
 0x1f5   : > { %4161 = vmatprep.mubr.msk.bf16.mxu1 %vm2024_vm12, %v4448_v48  ;;  %v3058_v48 = vrot.slane %v3057_v3, 4  ;;  %v3253_v3 = vsel %vm5030_vm15, %v3866_v17, %v3252_v18 }
 0x1f6   : > { %v3076_v63 = vrot.slane %v3074_v43, 5  ;;  %v3874_v29 = vcombine.low %v3249_v22, %v3253_v3 }
 0x1f7   : > { %v3063_v55 = vsel %vm4656_vm4, %v3058_v48, %v3062_v53  ;;  %v3871_v48 = vrot.slane %v3228_v8, 9 }
 0x1f8   : > { %v3077_v62 = vsel %vm4656_vm4, %v3072_v50, %v3076_v63  ;;  %v4453_v63 = vld [vmem:[%s4626_s21 + $0xe8] ss:$8 sps:$4 sm:$0xff]  }
 0x1f9   : > { %v3273_v50 = vsel %vm5030_vm15, %v3871_v48, %v3272_v54 }
 0x1fa   : > { %v3877_v53 = vcombine.low %v3273_v50, %v3277_v51 }
 0x1fc   : > { %4162 = vmatmul.mubr.msk.bf16.vlgmr.msra.gmra.mrb[4].mxu1 %vm2024_vm12, %v4449_v1  ;;  %v3049_v1 = vsel %vm4656_vm4, %v3044_v52, %v3048_v30  ;;  %v4452_v52 = vld [vmem:[%s4626_s21 + $0xd8] ss:$8 sps:$4 sm:$0xff]  }
 0x1fd   : > { %4170 = vmatpush3.bf16.msra.mxu1 %v3147_v38  ;;  %4165 = vmatprep.mubr.msk.bf16.mxu1 %vm2024_vm12, %v4450_v46  ;;  %v3116_v38 = vshll.u32 %v5201_v19, 16  ;;  %v3858_v11 = vcombine.low %v3049_v1, %v3063_v55  ;;  %v3091_v46 = vsel %vm4656_vm4, %v3086_v27, %v3090_v0  ;;  %v4454_v27 = vld [vmem:[%s4626_s21 + $0xf8] ss:$8 sps:$4 sm:$0xff]   ;;  %s3615_s21 = sshll.u32 %s269_s20, 6 }
 0x1fe   : > { %4371 = vmatprep.subr.msk.bf16.mxu1 %vm2037_vm7, %v5174_v4  ;;  %v3859_v23 = vcombine.low %v3077_v62, %v3091_v46  ;;  %v3104_v4 = vrot.slane %v3102_v2, 5  ;;  %v3882_v55 = vld [vmem:[%s5335_s4] ss:$0 sm:$0xff]  ;;  %s271_s29 = scalar_lea.vmem [#allocation3], %s3615_s21 }
 0x1ff   : > { %v3118_v10 = vrot.slane %v3116_v38, 5  ;;  %v3891_v62 = vld [vmem:[%s5337_s6] ss:$0 sm:$0xff]  ;;  %s3549_s9 = sshll.u32 %s271_s29, 4  ;;  %s5283_s9 = int_to_ptr.vmem [resolvable:$true] %s3549_s9 }
 0x200   : > { %v3105_v21 = vsel %vm4656_vm4, %v3100_v6, %v3104_v4  ;;  %v4215_v17 = vadd.f32 %v3891_v62, %v3882_v55  ;;  %s4456_s16 = scalar_lea.vmem %s5283_s9, 1024  ;;  %p4463_p0 = scmp.lt.s32.totalorder %s5283_s9, %s4461_s18 }
 0x201   : > { %v3119_v61 = vsel %vm4656_vm4, %v3114_v9, %v3118_v10  ;;  %p4457_p11 = scmp.ne.s32.totalorder %s5283_s9, %s4456_s16  ;;  %p4464_p1 = scmp.lt.s32.totalorder %s4462_s19, %s4456_s16 }
 0x202   : > { %v3860_v25 = vcombine.low %v3105_v21, %v3119_v61 }
 0x203   : > { %p4458_p12 = pnand %p4457_p11, %p4602_p5  ;;  %p4465_p2 = por %p4464_p1, %p4463_p0 }
 0x204   : > { %4166 = vmatmul.mubr.msk.bf16.gmra.mrb[0].mxu1 %vm2024_vm12, %v4451_v39  ;;  %v3261_v39 = vsel %vm5030_vm15, %v3868_v59, %v3260_v47 }
 0x205   : > { %4171 = vmatprep.mubr.msk.bf16.mxu1 %vm2024_vm12, %v3857_v45  ;;  %v3875_v43 = vcombine.low %v3257_v28, %v3261_v39  ;;  %v3876_v45 = vcombine.low %v3265_v57, %v3269_v26  ;;  %p4459_p13 = pneg %p4458_p12 }
 0x207   : > { %p4466_p3 = pnand %p4465_p2, %p4459_p13 }
 0x20c   : > { %4172 = vmatmul.mubr.msk.bf16.vlgmr.msra.gmra.mrb[4].mxu1 %vm2024_vm12, %v3858_v11 }
 0x20d   : > { %4180 = vmatpush3.bf16.msra.mxu1 %v3305_v37  ;;  %4175 = vmatprep.mubr.msk.bf16.mxu1 %vm2024_vm12, %v3859_v23 }
 0x20e   : > { %4372 = vmatprep.subr.msk.bf16.mxu1 %vm331_vm0, %v3403_v12 }
 0x214   : > { %4176 = vmatmul.mubr.msk.bf16.gmra.mrb[0].mxu1 %vm2024_vm12, %v3860_v25 }
 0x215   : > { %4181 = vmatprep.mubr.msk.bf16.mxu1 %vm2024_vm12, %v3874_v29 }
 0x21c   : > { %4182 = vmatmul.mubr.msk.bf16.vlgmr.msra.gmra.mrb[4].mxu1 %vm2024_vm12, %v3875_v43 }
 0x21d   : > { %4190 = vmatpush3.bf16.msra.mxu1 %v3444_v44  ;;  %4185 = vmatprep.mubr.msk.bf16.mxu1 %vm2024_vm12, %v3876_v45 }
 0x224   : > { %4186 = vmatmul.mubr.msk.bf16.gmra.mrb[0].mxu1 %vm2024_vm12, %v3877_v53 }
 0x225   : > { %4191 = vmatprep.mubr.msk.bf16.mxu1 %vm318_vm1, %v4452_v52 }
 0x22c   : > { %4192 = vmatmul.mubr.msk.bf16.vlgmr.msra.gmra.mrb[4].mxu1 %vm318_vm1, %v4453_v63 }
 0x22d   : > { %4195 = vmatprep.mubr.msk.bf16.mxu1 %vm318_vm1, %v4454_v27 }
 0x234   : > { %4196 = vmatmul.mubr.msk.bf16.gmra.mrb[0].mxu1 %vm318_vm1, %v4455_v58 }
 0x26d   : > { %v4103_v19 = vpop.f32.mrb[8].mxu0 }
 0x26e   : > { %v2075_v49 = vpop.f32.mrb[9].mxu0  ;;  %v4201_v0 = vadd.f32 %v4103_v19, %v3882_v55 }
 0x26f   : > { %v4104_v20 = vpop.f32.mrb[10].mxu0  ;;  %v4204_v1 = vadd.f32 %v3882_v55, %v2075_v49 }
 0x270   : > { %v2078_v30 = vpop.f32.mrb[11].mxu0  ;;  %v4207_v56 = vadd.f32 %v4104_v20, %v3882_v55 }
 0x271   : > { %v4210_v38 = vadd.f32 %v3882_v55, %v2078_v30 }
 0x272   : > { %v4208_v37 = vadd.f32 %v4207_v56, %v3891_v62 }
 0x273   : > { %v4211_v23 = vadd.f32 %v4210_v38, %v3891_v62 }
 0x2ff   : > { %v4193_v2 = vpop.f32.mrb[4].mxu1 }
 0x300   : > { %v4202_v31 = vadd.f32 %v4201_v0, %v4193_v2  ;;  %v3480_v11 = vpop.f32.mrb[5].mxu1 }
 0x301   : > { %v4205_v46 = vadd.f32 %v4204_v1, %v3480_v11  ;;  %v4194_v9 = vpop.f32.mrb[6].mxu1 }
 0x302   : > { %v4203_v6 = vadd.f32 %v4202_v31, %v3891_v62  ;;  %v4209_v10 = vadd.f32 %v4208_v37, %v4194_v9  ;;  %v3483_v41 = vpop.f32.mrb[7].mxu1 }
 0x303   : > { %v4206_v12 = vadd.f32 %v4205_v46, %v3891_v62  ;;  %v4212_v13 = vadd.f32 %v4211_v23, %v3483_v41 }
 0x304   : > { %v3521_v15 = vmax.f32 %v4203_v6, 0.0  ;;  %v3522_v4 = vmax.f32 %v4209_v10, 0.0 }
 0x305   : > { %v3519_v18 = vmax.f32 %v4206_v12, 0.0  ;;  %v3520_v21 = vmax.f32 %v4212_v13, 0.0 }
 0x306   : > { %3529 = vst.msk [vmem:[%s271_s29 + $0x10] sm:$0xff] %vm2024_vm12, %v3521_v15  ;;  %3530 = vst.msk [vmem:[%s271_s29 + $0x18] sm:$0xff] %vm2024_vm12, %v3522_v4 }
 0x307   : > { %3527 = vst.msk [vmem:[%s271_s29] sm:$0xff] %vm2024_vm12, %v3519_v18  ;;  %3528 = vst.msk [vmem:[%s271_s29 + $0x8] sm:$0xff] %vm2024_vm12, %v3520_v21  ;;  %v4197_v61 = vpop.f32.mrb[0].mxu1 }
 0x308   : > { %v4214_v22 = vadd.f32 %v4215_v17, %v4197_v61  ;;  %v3496_v24 = vpop.f32.mrb[1].mxu1 }
 0x309   : > { %v4216_v16 = vadd.f32 %v4215_v17, %v3496_v24  ;;  %v4198_v25 = vpop.f32.mrb[2].mxu1 }
 0x30a   : > { %v3525_v3 = vmax.f32 %v4214_v22, 0.0  ;;  %v4218_v60 = vadd.f32 %v4215_v17, %v4198_v25  ;;  %v3499_v29 = vpop.f32.mrb[3].mxu1 }
 0x30b   : > { %v3523_v59 = vmax.f32 %v4216_v16, 0.0  ;;  %v4220_v47 = vadd.f32 %v4215_v17, %v3499_v29 }
 0x30c   : > { %3533 = vst.msk [vmem:[%s271_s29 + $0x30] sm:$0xff] %vm2024_vm12, %v3525_v3  ;;  %v3526_v14 = vmax.f32 %v4218_v60, 0.0 }
 0x30d   : > { %3531 = vst.msk [vmem:[%s271_s29 + $0x20] sm:$0xff] %vm2024_vm12, %v3523_v59  ;;  %v3524_v5 = vmax.f32 %v4220_v47, 0.0 }
 0x30e   : > { %3534 = vst.msk [vmem:[%s271_s29 + $0x38] sm:$0xff] %vm2024_vm12, %v3526_v14 }
 0x30f   : > { %3532 = vst.msk [vmem:[%s271_s29 + $0x28] sm:$0xff] %vm2024_vm12, %v3524_v5 }
 0x310   : > { %4469 = shalt.err (!%p4466_p3)
}
 0x311   : > { %s4470_s20 = scalar_lea.hbm %s5281_s15, 1024  ;;  %s4474_s21 = scalar_lea.hbm %s5338_s7, 2048 }
 0x312   : > { %p4471_p4 = scmp.ne.s32.totalorder %s5281_s15, %s4470_s20  ;;  %p4475_p9 = scmp.lt.u32.totalorder %s5281_s15, %s5338_s7 }
 0x313   : > { %p4476_p10 = scmp.lt.u32.totalorder %s4474_s21, %s4470_s20  ;;  %p4478_p12 = scmp.lt.u32.totalorder %s4470_s20, %s5281_s15 }
 0x314   : > { %p4472_p7 = pnand %p4471_p4, %p4602_p5 }
 0x315   : > { %p4477_p11 = por %p4476_p10, %p4475_p9 }
 0x316   : > { %p4473_p8 = pneg %p4472_p7 }
 0x317   : > { %p4479_p13 = por %p4478_p12, %p4477_p11 }
 0x319   : > { %p4480_p0 = pnand %p4479_p13, %p4473_p8 }
 0x31b   : > { %4483 = shalt.err (!%p4480_p0)
}
 0x31c   : > { %s4522_s13 = smov 128   ;;  %s4523_s14 = smov 8  }
 0x31d   : > { %4374 = dma.vmem_to_hbm [thread:$0]  (%p4602_p5), %s5283_s9, 1024, %s5281_s15, %s5290_s28, %s4522_s13, %s4522_s13, %s4523_s14  }
 0x31e PF: > { %p4380_p1 = scmp.ge.s32.totalorder %s4518_s27, 2  ;;  %s3564_s16 = sand.u32 1, %s4506_s24  }
 0x31f   : > { %s3565_s17 = scalar_lea.sflag [#allocation4], %s3564_s16 }
 0x320   : > { %p4377_p2 = pnand %p4380_p1, %p4606_p6 }
 0x322   : > { %4501 = dma.done.wait (!%p4377_p2), %s3565_s17, 1024  }
 0x323   : > { %4503 = vsyncadd (!%p4377_p2), %s3565_s17, 4294966272  ;;  %p17_p3 = scmp.ge.s32.totalorder %s4589_s30, 4   ;;  %s5349_s24 = smov %s4510_s25 }
 0x324   : > { %s5350_s25 = smov %s4514_s26  ;;  %s5351_s26 = smov %s4600_s10 }
 0x325   : > { %s5352_s27 = smov %s4589_s30  ;;  %19 = sbr.rel (!%p17_p3) target bundleno = 3 (0x3), region = 106 }
 0x32c   :  { %3570 = vsyncpa [#allocation4], 1 }
 0x32d   :  { %3572 = vsyncpa [#allocation4 + $0x1], 1 }

</bundles_post_ra>
